<compile_context>
chip_gen: v7x
topology: tpu7x:2x2x1
jax: 0.10.0
libtpu: 0.0.40
codegen_flags: <defaults>
</compile_context>

<pallas_src>
import functools

import jax
import jax.numpy as jnp
from jax import lax
from jax.experimental import pallas as pl
from jax.experimental.pallas import tpu as pltpu

VMEM = pltpu.MemorySpace.VMEM
SMEM = pltpu.MemorySpace.SMEM


def _pick_tile(n, target, align):
    """Largest tile t <= target with n % t == 0 and t % align == 0, else n."""
    if n <= target:
        return n
    t = (target // align) * align
    while t >= align:
        if n % t == 0:
            return t
        t -= align
    return n


# --------------------------- lane-dense 1x1 convs ---------------------------

def _wx_kernel(w_ref, x_ref, o_ref):
    # y[Cout, tl] = W[Cout, Cin] @ x[Cin, tl]  (lane-dense output)
    o_ref[...] = jnp.dot(w_ref[...], x_ref[...],
                         preferred_element_type=jnp.float32).astype(o_ref.dtype)


def conv1x1(x, w, tl_target=512):
    """Conv1d(kernel=1, bias=False). x: [M, Cin, L], w: [Cout, Cin]."""
    M, C, L = x.shape
    Cout = w.shape[0]
    tl = _pick_tile(L, tl_target, 128)
    return pl.pallas_call(
        _wx_kernel,
        out_shape=jax.ShapeDtypeStruct((M, Cout, L), jnp.float32),
        grid=(M, L // tl),
        in_specs=[pl.BlockSpec((Cout, C), lambda m, j: (0, 0)),
                  pl.BlockSpec((None, C, tl), lambda m, j: (m, 0, j))],
        out_specs=pl.BlockSpec((None, Cout, tl), lambda m, j: (m, 0, j)),
        compiler_params=pltpu.CompilerParams(
            dimension_semantics=("parallel", "parallel")),
    )(w, x)


def _av_kernel(wx_ref, wv_ref, x_ref, v_ref, o_ref):
    # Avoids materialising the channel-concat: y = Wx @ x + Wv @ vis.
    y = jnp.dot(wx_ref[...], x_ref[...], preferred_element_type=jnp.float32)
    y = y + jnp.dot(wv_ref[...], v_ref[...], preferred_element_type=jnp.float32)
    o_ref[...] = y.astype(o_ref.dtype)


def av_conv(x, vis, wx, wv, tl_target=512):
    """av_conv applied to cat([x, vis], dim=1) without the concat."""
    M, Cx, L = x.shape
    Cv = vis.shape[1]
    Cout = wx.shape[0]
    tl = _pick_tile(L, tl_target, 128)
    return pl.pallas_call(
        _av_kernel,
        out_shape=jax.ShapeDtypeStruct((M, Cout, L), jnp.float32),
        grid=(M, L // tl),
        in_specs=[pl.BlockSpec((Cout, Cx), lambda m, j: (0, 0)),
                  pl.BlockSpec((Cout, Cv), lambda m, j: (0, 0)),
                  pl.BlockSpec((None, Cx, tl), lambda m, j: (m, 0, j)),
                  pl.BlockSpec((None, Cv, tl), lambda m, j: (m, 0, j))],
        out_specs=pl.BlockSpec((None, Cout, tl), lambda m, j: (m, 0, j)),
        compiler_params=pltpu.CompilerParams(
            dimension_semantics=("parallel", "parallel")),
    )(wx, wv, x, vis)


def _prelu_wx_relu_kernel(a_ref, w_ref, x_ref, o_ref):
    a = a_ref[0, 0]                                     # PReLU single param
    x = x_ref[...]
    xp = jnp.where(x > 0, x, a * x)
    y = jnp.dot(w_ref[...], xp, preferred_element_type=jnp.float32)
    o_ref[...] = jnp.maximum(y, 0.0).astype(o_ref.dtype)


def prelu_maskconv_relu(x, mask_w, alpha, tl_target=512):
    """Fused PReLU -> Conv1d(1x1, no bias) -> ReLU. x: [M, Bc, L]."""
    M, Bc, L = x.shape
    N = mask_w.shape[0]
    tl = _pick_tile(L, tl_target, 128)
    return pl.pallas_call(
        _prelu_wx_relu_kernel,
        out_shape=jax.ShapeDtypeStruct((M, N, L), jnp.float32),
        grid=(M, L // tl),
        in_specs=[pl.BlockSpec((1, 1), lambda m, j: (0, 0), memory_space=SMEM),
                  pl.BlockSpec((N, Bc), lambda m, j: (0, 0)),
                  pl.BlockSpec((None, Bc, tl), lambda m, j: (m, 0, j))],
        out_specs=pl.BlockSpec((None, N, tl), lambda m, j: (m, 0, j)),
        compiler_params=pltpu.CompilerParams(
            dimension_semantics=("parallel", "parallel")),
    )(alpha, mask_w, x)


# ---------------------------- GroupNorm kernels -----------------------------

def _gn_kernel(x_ref, w_ref, b_ref, o_ref, *, eps):
    x = x_ref[...]                                      # [C, L] per sample
    mean = jnp.mean(x)
    var = jnp.mean((x - mean) ** 2)
    xn = (x - mean) * lax.rsqrt(var + eps)
    o_ref[...] = (xn * w_ref[...] + b_ref[...]).astype(o_ref.dtype)


def _gn_res_kernel(x_ref, r_ref, w_ref, b_ref, o_ref, *, eps):
    x = x_ref[...]
    mean = jnp.mean(x)
    var = jnp.mean((x - mean) ** 2)
    xn = (x - mean) * lax.rsqrt(var + eps)
    o_ref[...] = (xn * w_ref[...] + b_ref[...] + r_ref[...]).astype(o_ref.dtype)


def groupnorm(x, w, b, eps=1e-8):
    """GroupNorm(num_groups=1). x: [M, C, L]; w, b: [C, 1]."""
    M, C, L = x.shape
    return pl.pallas_call(
        functools.partial(_gn_kernel, eps=eps),
        out_shape=jax.ShapeDtypeStruct((M, C, L), jnp.float32),
        grid=(M,),
        in_specs=[pl.BlockSpec((None, C, L), lambda m: (m, 0, 0)),
                  pl.BlockSpec((C, 1), lambda m: (0, 0)),
                  pl.BlockSpec((C, 1), lambda m: (0, 0))],
        out_specs=pl.BlockSpec((None, C, L), lambda m: (m, 0, 0)),
        compiler_params=pltpu.CompilerParams(dimension_semantics=("parallel",)),
    )(x, w, b)


def groupnorm_residual(x, res, w, b, eps=1e-8):
    """GroupNorm(1) with fused residual add: gn(x) + res."""
    M, C, L = x.shape
    return pl.pallas_call(
        functools.partial(_gn_res_kernel, eps=eps),
        out_shape=jax.ShapeDtypeStruct((M, C, L), jnp.float32),
        grid=(M,),
        in_specs=[pl.BlockSpec((None, C, L), lambda m: (m, 0, 0)),
                  pl.BlockSpec((None, C, L), lambda m: (m, 0, 0)),
                  pl.BlockSpec((C, 1), lambda m: (0, 0)),
                  pl.BlockSpec((C, 1), lambda m: (0, 0))],
        out_specs=pl.BlockSpec((None, C, L), lambda m: (m, 0, 0)),
        compiler_params=pltpu.CompilerParams(dimension_semantics=("parallel",)),
    )(x, res, w, b)


# ---------------------- row-tiled matmul (LSTM in-proj) ----------------------

def _mm_bias_kernel(a_ref, b_ref, bias_ref, o_ref):
    y = jnp.dot(a_ref[...], b_ref[...], preferred_element_type=jnp.float32)
    o_ref[...] = (y + bias_ref[...]).astype(o_ref.dtype)


def matmul_bias(a, b, bias, tm_target=256):
    """a: [R, K] @ b: [K, N] + bias: [1, N], tiled over rows (parallel).

    K and N here are small feature dims (Bc, 4H) so they stay un-tiled; the
    unbounded row axis (T * batch_of_seqs) is tiled for VMEM + pipelining.
    """
    R, Kc = a.shape
    Nc = b.shape[1]
    tm = _pick_tile(R, tm_target, 8)
    return pl.pallas_call(
        _mm_bias_kernel,
        out_shape=jax.ShapeDtypeStruct((R, Nc), jnp.float32),
        grid=(R // tm,),
        in_specs=[pl.BlockSpec((tm, Kc), lambda i: (i, 0)),
                  pl.BlockSpec((Kc, Nc), lambda i: (0, 0)),
                  pl.BlockSpec((1, Nc), lambda i: (0, 0))],
        out_specs=pl.BlockSpec((tm, Nc), lambda i: (i, 0)),
        compiler_params=pltpu.CompilerParams(dimension_semantics=("parallel",)),
    )(a, b, bias)


# ------------------------ streaming LSTM (+ fused lin) -----------------------

def _lstm_step_kernel(xp_ref, whh_ref, wlin_ref, blin_ref, o_ref, h_sc, c_sc):
    # One grid step == one timestep.  Input projection was hoisted outside,
    # so the recurrence is a single [BS,H] @ [H,4H] matmul + gates, and the
    # intra/inter Linear is fused into the output write.
    @pl.when(pl.program_id(0) == 0)
    def _():
        h_sc[...] = jnp.zeros_like(h_sc)
        c_sc[...] = jnp.zeros_like(c_sc)

    Hd = h_sc.shape[-1]
    gates = xp_ref[...] + jnp.dot(h_sc[...], whh_ref[...],
                                  preferred_element_type=jnp.float32)
    # NOTE: for the production model pick H a multiple of 32 (ideally 128) so
    # these lane-axis gate slices are tile-aligned.
    i = jax.nn.sigmoid(gates[:, 0:Hd])
    f = jax.nn.sigmoid(gates[:, Hd:2 * Hd])
    g = jnp.tanh(gates[:, 2 * Hd:3 * Hd])
    o = jax.nn.sigmoid(gates[:, 3 * Hd:4 * Hd])
    c = f * c_sc[...] + i * g
    h = o * jnp.tanh(c)
    c_sc[...] = c
    h_sc[...] = h
    o_ref[...] = (jnp.dot(h, wlin_ref[...], preferred_element_type=jnp.float32)
                  + blin_ref[...]).astype(o_ref.dtype)


def lstm_proj(xproj, whh_t, wlin_t, blin):
    """Streamed single-layer LSTM with fused output Linear.

    xproj: [T, BS, 4H]  (already x @ W_ih^T + b_ih + b_hh, time-major)
    whh_t: [H, 4H]  wlin_t: [H, Cout]  blin: [1, Cout]
    Returns [T, BS, Cout]; zero initial state, PyTorch gate order (i,f,g,o).
    """
    T, BS, G = xproj.shape
    Hd = whh_t.shape[0]
    Cout = wlin_t.shape[1]
    return pl.pallas_call(
        _lstm_step_kernel,
        out_shape=jax.ShapeDtypeStruct((T, BS, Cout), jnp.float32),
        grid=(T,),
        in_specs=[pl.BlockSpec((None, BS, G), lambda t: (t, 0, 0)),
                  pl.BlockSpec((Hd, G), lambda t: (0, 0)),
                  pl.BlockSpec((Hd, Cout), lambda t: (0, 0)),
                  pl.BlockSpec((1, Cout), lambda t: (0, 0))],
        out_specs=pl.BlockSpec((None, BS, Cout), lambda t: (t, 0, 0)),
        scratch_shapes=[pltpu.VMEM((BS, Hd), jnp.float32),
                        pltpu.VMEM((BS, Hd), jnp.float32)],
        compiler_params=pltpu.CompilerParams(dimension_semantics=("arbitrary",)),
    )(xproj, whh_t, wlin_t, blin)


# ------------------------------- glue (JAX) ---------------------------------

def linear_interp_1d(v, out_len):
    """F.interpolate(v, out_len, mode='linear', align_corners=False)."""
    _, _, T = v.shape
    scale = T / out_len
    idx = jnp.arange(out_len, dtype=jnp.float32)
    src = (idx + 0.5) * scale - 0.5
    src = jnp.maximum(src, 0.0)
    i0 = jnp.clip(jnp.floor(src).astype(jnp.int32), 0, T - 1)
    i1 = jnp.minimum(i0 + 1, T - 1)
    lam = src - i0.astype(jnp.float32)
    return v[:, :, i0] * (1.0 - lam) + v[:, :, i1] * lam


def segmentation(x, K):
    """[B, N, L] -> ([B, N, K, S], gap). Mirrors _Segmentation/_padding."""
    B, N, L = x.shape
    P = K // 2
    gap = K - (P + L % K) % K
    if gap > 0:
        x = jnp.concatenate([x, jnp.zeros((B, N, gap), x.dtype)], axis=2)
    pad = jnp.zeros((B, N, P), x.dtype)
    x = jnp.concatenate([pad, x, pad], axis=2)
    x1 = x[:, :, :-P].reshape(B, N, -1, K)
    x2 = x[:, :, P:].reshape(B, N, -1, K)
    x = jnp.concatenate([x1, x2], axis=3).reshape(B, N, -1, K)
    return jnp.swapaxes(x, 2, 3), gap


def over_add(x, gap):
    """[B, N, K, S] -> [B, N, L]. Mirrors _over_add."""
    B, N, K, S = x.shape
    P = K // 2
    x = jnp.swapaxes(x, 2, 3).reshape(B, N, -1, K * 2)
    x1 = x[:, :, :, :K].reshape(B, N, -1)[:, :, P:]
    x2 = x[:, :, :, K:].reshape(B, N, -1)[:, :, :-P]
    x = x1 + x2
    if gap > 0:
        x = x[:, :, :-gap]
    return x


def dual_rnn_block(x, p):
    """x: [B, N, K, S] -> [B, N, K, S]."""
    B_, N_, K_, S_ = x.shape
    H4 = p['intra_whh'].shape[1]

    # ---- intra (sequences over K, batch of B*S), built directly time-major ----
    intra_in = jnp.transpose(x, (2, 0, 3, 1)).reshape(K_, B_ * S_, N_)
    xproj = matmul_bias(intra_in.reshape(K_ * B_ * S_, N_),
                        p['intra_wih'], p['intra_b']).reshape(K_, B_ * S_, H4)
    h = lstm_proj(xproj, p['intra_whh'], p['intra_lin_w'], p['intra_lin_b'])
    intra = jnp.transpose(h.reshape(K_, B_, S_, N_), (1, 3, 0, 2))  # [B,N,K,S]
    intra = groupnorm_residual(intra.reshape(B_, N_, K_ * S_),
                               x.reshape(B_, N_, K_ * S_),
                               p['intra_norm_w'], p['intra_norm_b']
                               ).reshape(B_, N_, K_, S_)

    # ---- inter (sequences over S, batch of B*K) ----
    inter_in = jnp.transpose(intra, (3, 0, 2, 1)).reshape(S_, B_ * K_, N_)
    xproj = matmul_bias(inter_in.reshape(S_ * B_ * K_, N_),
                        p['inter_wih'], p['inter_b']).reshape(S_, B_ * K_, H4)
    h = lstm_proj(xproj, p['inter_whh'], p['inter_lin_w'], p['inter_lin_b'])
    inter = jnp.transpose(h.reshape(S_, B_, K_, N_), (1, 3, 2, 0))  # [B,N,K,S]
    out = groupnorm_residual(inter.reshape(B_, N_, K_ * S_),
                             intra.reshape(B_, N_, K_ * S_),
                             p['inter_norm_w'], p['inter_norm_b']
                             ).reshape(B_, N_, K_, S_)
    return out


def rnn_forward(x, visual, params, K, R):
    """x: [M, N, D]; visual: [M, emb, Tv] -> est_mask: [M, N, D]."""
    M, N, D = x.shape
    x = groupnorm(x, params['ln_w'], params['ln_b'])            # layer_norm
    x = conv1x1(x, params['bottleneck_w'])                      # [M, Bc, D]
    vis = linear_interp_1d(visual, D)                           # [M, emb, D]
    x = av_conv(x, vis, params['av_wx'], params['av_wv'])       # [M, Bc, D]
    x, gap = segmentation(x, K)                                 # [M, Bc, K, S]
    for i in range(R):
        x = dual_rnn_block(x, params['blocks'][i])
    x = over_add(x, gap)                                        # [M, Bc, D]
    return prelu_maskconv_relu(x, params['mask_w'], params['prelu_a'])


# ------------------------------- init & main --------------------------------

def init_params(key, N, Bc, H, R, emb):
    keys = iter(jax.random.split(key, 128))

    def rnd(shape, scale=0.1):
        return jax.random.normal(next(keys), shape, jnp.float32) * scale

    params = {
        'ln_w': rnd((N, 1)) + 1.0,
        'ln_b': rnd((N, 1)),
        'bottleneck_w': rnd((Bc, N)),
        'av_wx': rnd((Bc, Bc)),
        'av_wv': rnd((Bc, emb)),
        'mask_w': rnd((N, Bc)),
        'prelu_a': jnp.full((1, 1), 0.25, jnp.float32),
        'blocks': [],
    }
    for _ in range(R):
        params['blocks'].append({
            'intra_wih': rnd((Bc, 4 * H)),        # W_ih^T, gate order i,f,g,o
            'intra_whh': rnd((H, 4 * H)),         # W_hh^T
            'intra_b': rnd((1, 4 * H)),           # b_ih + b_hh combined
            'intra_lin_w': rnd((H, Bc)),          # Linear weight^T
            'intra_lin_b': rnd((1, Bc)),
            'intra_norm_w': rnd((Bc, 1)) + 1.0,
            'intra_norm_b': rnd((Bc, 1)),
            'inter_wih': rnd((Bc, 4 * H)),
            'inter_whh': rnd((H, 4 * H)),
            'inter_b': rnd((1, 4 * H)),
            'inter_lin_w': rnd((H, Bc)),
            'inter_lin_b': rnd((1, Bc)),
            'inter_norm_w': rnd((Bc, 1)) + 1.0,
            'inter_norm_b': rnd((Bc, 1)),
        })
    return params


if __name__ == "__main__":
    # Module hyper-params (small): N=16, B=8, H=16, K=8, R=2, emb_size=8
    N, Bc, H, K, R, emb = 16, 8, 16, 8, 2, 8
    M, D, Tv = 2, 16, 4

    key = jax.random.PRNGKey(0)
    kx, kv, kp = jax.random.split(key, 3)
    x = jax.random.normal(kx, (M, N, D), jnp.float32)
    visual = jax.random.normal(kv, (M, emb, Tv), jnp.float32)
    params = init_params(kp, N, Bc, H, R, emb)

    fwd = jax.jit(functools.partial(rnn_forward, K=K, R=R))
    out = fwd(x, visual, params)
    out = jax.block_until_ready(out)

    assert out.shape == (M, N, D), out.shape
    assert bool(jnp.all(jnp.isfinite(out)))
    assert bool(jnp.all(out >= 0.0))  # final ReLU
    print("KERNEL_OK")
</pallas_src>

<mosaic_0001>
module attributes {stable_mosaic.version = 11 : i64} {
  func.func @_av_kernel(%arg0: i32, %arg1: i32, %arg2: memref<8x8xf32, #tpu.memory_space<vmem>>, %arg3: memref<8x8xf32, #tpu.memory_space<vmem>>, %arg4: memref<1x8x16xf32, #tpu.memory_space<vmem>>, %arg5: memref<1x8x16xf32, #tpu.memory_space<vmem>>, %arg6: memref<1x8x16xf32, #tpu.memory_space<vmem>>) attributes {dimension_semantics = [#tpu.dimension_semantics<parallel>, #tpu.dimension_semantics<parallel>], iteration_bounds = array<i64: 2, 1>, scalar_prefetch = 0 : i64, scratch_operands = 0 : i64, tpu.core_type = #tpu.core_type<tc>, window_params = [{pipeline_mode = #tpu.pipeline_mode<synchronous>, transform_indices = @transform_0, window_bounds = array<i64: 8, 8>}, {pipeline_mode = #tpu.pipeline_mode<synchronous>, transform_indices = @transform_1, window_bounds = array<i64: 8, 8>}, {transform_indices = @transform_2, window_bounds = array<i64: 1, 8, 16>}, {transform_indices = @transform_3, window_bounds = array<i64: 1, 8, 16>}, {transform_indices = @transform_4, window_bounds = array<i64: 1, 8, 16>}]} {
    %c0 = arith.constant 0 : index
    %c0_0 = arith.constant 0 : index
    %0 = vector.load %arg2[%c0, %c0_0] : memref<8x8xf32, #tpu.memory_space<vmem>>, vector<8x8xf32>
    %c0_1 = arith.constant 0 : index
    %c0_2 = arith.constant 0 : index
    %c0_3 = arith.constant 0 : index
    %1 = vector.load %arg4[%c0_1, %c0_2, %c0_3] : memref<1x8x16xf32, #tpu.memory_space<vmem>>, vector<1x8x16xf32>
    %2 = vector.shape_cast %1 : vector<1x8x16xf32> to vector<8x16xf32>
    %cst = arith.constant dense<0.000000e+00> : vector<8x16xf32>
    %3 = tpu.matmul %0, %2, %cst {dimension_numbers = #tpu.dot_dimension_numbers<[1], [0], [0], [1], [0, 0, 1, 1], [], []>} : vector<8x8xf32>, vector<8x16xf32>, vector<8x16xf32> -> vector<8x16xf32>
    %c0_4 = arith.constant 0 : index
    %c0_5 = arith.constant 0 : index
    %4 = vector.load %arg3[%c0_4, %c0_5] : memref<8x8xf32, #tpu.memory_space<vmem>>, vector<8x8xf32>
    %c0_6 = arith.constant 0 : index
    %c0_7 = arith.constant 0 : index
    %c0_8 = arith.constant 0 : index
    %5 = vector.load %arg5[%c0_6, %c0_7, %c0_8] : memref<1x8x16xf32, #tpu.memory_space<vmem>>, vector<1x8x16xf32>
    %6 = vector.shape_cast %5 : vector<1x8x16xf32> to vector<8x16xf32>
    %cst_9 = arith.constant dense<0.000000e+00> : vector<8x16xf32>
    %7 = tpu.matmul %4, %6, %cst_9 {dimension_numbers = #tpu.dot_dimension_numbers<[1], [0], [0], [1], [0, 0, 1, 1], [], []>} : vector<8x8xf32>, vector<8x16xf32>, vector<8x16xf32> -> vector<8x16xf32>
    %8 = arith.addf %3, %7 : vector<8x16xf32>
    %c0_10 = arith.constant 0 : index
    %c0_11 = arith.constant 0 : index
    %c0_12 = arith.constant 0 : index
    %9 = vector.load %arg6[%c0_10, %c0_11, %c0_12] : memref<1x8x16xf32, #tpu.memory_space<vmem>>, vector<1x8x16xf32>
    %10 = vector.shape_cast %9 : vector<1x8x16xf32> to vector<8x16xf32>
    %11 = vector.shape_cast %8 : vector<8x16xf32> to vector<1x8x16xf32>
    tpu.vector_store %arg6[%c0_10, %c0_11, %c0_12], %11 {strides = array<i32>} : memref<1x8x16xf32, #tpu.memory_space<vmem>>, vector<1x8x16xf32>,
    return
  }
  func.func @transform_0(%arg0: i32, %arg1: i32) -> (i32, i32) {
    %c0_i32 = arith.constant 0 : i32
    %c0_i32_0 = arith.constant 0 : i32
    %c0_i32_1 = arith.constant 0 : i32
    return %c0_i32, %c0_i32_0 : i32, i32
  }
  func.func @transform_1(%arg0: i32, %arg1: i32) -> (i32, i32) {
    %c0_i32 = arith.constant 0 : i32
    %c0_i32_0 = arith.constant 0 : i32
    %c0_i32_1 = arith.constant 0 : i32
    return %c0_i32, %c0_i32_0 : i32, i32
  }
  func.func @transform_2(%arg0: i32, %arg1: i32) -> (i32, i32, i32) {
    %c0_i32 = arith.constant 0 : i32
    %c0_i32_0 = arith.constant 0 : i32
    return %arg0, %c0_i32, %arg1 : i32, i32, i32
  }
  func.func @transform_3(%arg0: i32, %arg1: i32) -> (i32, i32, i32) {
    %c0_i32 = arith.constant 0 : i32
    %c0_i32_0 = arith.constant 0 : i32
    return %arg0, %c0_i32, %arg1 : i32, i32, i32
  }
  func.func @transform_4(%arg0: i32, %arg1: i32) -> (i32, i32, i32) {
    %c0_i32 = arith.constant 0 : i32
    %c0_i32_0 = arith.constant 0 : i32
    return %arg0, %c0_i32, %arg1 : i32, i32, i32
  }
}

module attributes {stable_mosaic.version = 11 : i64} {
  func.func @_wx_kernel(%arg0: i32, %arg1: i32, %arg2: memref<8x16xf32, #tpu.memory_space<vmem>>, %arg3: memref<1x16x16xf32, #tpu.memory_space<vmem>>, %arg4: memref<1x8x16xf32, #tpu.memory_space<vmem>>) attributes {dimension_semantics = [#tpu.dimension_semantics<parallel>, #tpu.dimension_semantics<parallel>], iteration_bounds = array<i64: 2, 1>, scalar_prefetch = 0 : i64, scratch_operands = 0 : i64, tpu.core_type = #tpu.core_type<tc>, window_params = [{pipeline_mode = #tpu.pipeline_mode<synchronous>, transform_indices = @transform_0, window_bounds = array<i64: 8, 16>}, {transform_indices = @transform_1, window_bounds = array<i64: 1, 16, 16>}, {transform_indices = @transform_2, window_bounds = array<i64: 1, 8, 16>}]} {
    %c0 = arith.constant 0 : index
    %c0_0 = arith.constant 0 : index
    %0 = vector.load %arg2[%c0, %c0_0] : memref<8x16xf32, #tpu.memory_space<vmem>>, vector<8x16xf32>
    %c0_1 = arith.constant 0 : index
    %c0_2 = arith.constant 0 : index
    %c0_3 = arith.constant 0 : index
    %1 = vector.load %arg3[%c0_1, %c0_2, %c0_3] : memref<1x16x16xf32, #tpu.memory_space<vmem>>, vector<1x16x16xf32>
    %2 = vector.shape_cast %1 : vector<1x16x16xf32> to vector<16x16xf32>
    %cst = arith.constant dense<0.000000e+00> : vector<8x16xf32>
    %3 = tpu.matmul %0, %2, %cst {dimension_numbers = #tpu.dot_dimension_numbers<[1], [0], [0], [1], [0, 0, 1, 1], [], []>} : vector<8x16xf32>, vector<16x16xf32>, vector<8x16xf32> -> vector<8x16xf32>
    %c0_4 = arith.constant 0 : index
    %c0_5 = arith.constant 0 : index
    %c0_6 = arith.constant 0 : index
    %4 = vector.load %arg4[%c0_4, %c0_5, %c0_6] : memref<1x8x16xf32, #tpu.memory_space<vmem>>, vector<1x8x16xf32>
    %5 = vector.shape_cast %4 : vector<1x8x16xf32> to vector<8x16xf32>
    %6 = vector.shape_cast %3 : vector<8x16xf32> to vector<1x8x16xf32>
    tpu.vector_store %arg4[%c0_4, %c0_5, %c0_6], %6 {strides = array<i32>} : memref<1x8x16xf32, #tpu.memory_space<vmem>>, vector<1x8x16xf32>,
    return
  }
  func.func @transform_0(%arg0: i32, %arg1: i32) -> (i32, i32) {
    %c0_i32 = arith.constant 0 : i32
    %c0_i32_0 = arith.constant 0 : i32
    %c0_i32_1 = arith.constant 0 : i32
    return %c0_i32, %c0_i32_0 : i32, i32
  }
  func.func @transform_1(%arg0: i32, %arg1: i32) -> (i32, i32, i32) {
    %c0_i32 = arith.constant 0 : i32
    %c0_i32_0 = arith.constant 0 : i32
    return %arg0, %c0_i32, %arg1 : i32, i32, i32
  }
  func.func @transform_2(%arg0: i32, %arg1: i32) -> (i32, i32, i32) {
    %c0_i32 = arith.constant 0 : i32
    %c0_i32_0 = arith.constant 0 : i32
    return %arg0, %c0_i32, %arg1 : i32, i32, i32
  }
}

module attributes {stable_mosaic.version = 11 : i64} {
  func.func @_gn_kernel(%arg0: i32, %arg1: memref<1x16x16xf32, #tpu.memory_space<vmem>>, %arg2: memref<16x1xf32, #tpu.memory_space<vmem>>, %arg3: memref<16x1xf32, #tpu.memory_space<vmem>>, %arg4: memref<1x16x16xf32, #tpu.memory_space<vmem>>) attributes {dimension_semantics = [#tpu.dimension_semantics<parallel>], iteration_bounds = array<i64: 2>, scalar_prefetch = 0 : i64, scratch_operands = 0 : i64, tpu.core_type = #tpu.core_type<tc>, window_params = [{transform_indices = @transform_0, window_bounds = array<i64: 1, 16, 16>}, {pipeline_mode = #tpu.pipeline_mode<synchronous>, transform_indices = @transform_1, window_bounds = array<i64: 16, 1>}, {pipeline_mode = #tpu.pipeline_mode<synchronous>, transform_indices = @transform_2, window_bounds = array<i64: 16, 1>}, {transform_indices = @transform_3, window_bounds = array<i64: 1, 16, 16>}]} {
    %c0 = arith.constant 0 : index
    %c0_0 = arith.constant 0 : index
    %c0_1 = arith.constant 0 : index
    %0 = vector.load %arg1[%c0, %c0_0, %c0_1] : memref<1x16x16xf32, #tpu.memory_space<vmem>>, vector<1x16x16xf32>
    %1 = vector.shape_cast %0 : vector<1x16x16xf32> to vector<16x16xf32>
    %2 = vector.shape_cast %1 : vector<16x16xf32> to vector<1x16x16xf32>
    %cst = arith.constant dense<0.000000e+00> : vector<1xf32>
    %3 = vector.multi_reduction <add>, %2, %cst [1, 2] : vector<1x16x16xf32> to vector<1xf32>
    %4 = vector.shape_cast %3 : vector<1xf32> to vector<1x1x1xf32>
    %5 = vector.extract %4[0, 0, 0] : f32 from vector<1x1x1xf32>
    %cst_2 = arith.constant 2.560000e+02 : f32
    %6 = arith.divf %5, %cst_2 : f32
    %7 = vector.broadcast %6 : f32 to vector<16x16xf32>
    %8 = arith.subf %1, %7 : vector<16x16xf32>
    %9 = arith.mulf %8, %8 : vector<16x16xf32>
    %10 = vector.shape_cast %9 : vector<16x16xf32> to vector<1x16x16xf32>
    %cst_3 = arith.constant dense<0.000000e+00> : vector<1xf32>
    %11 = vector.multi_reduction <add>, %10, %cst_3 [1, 2] : vector<1x16x16xf32> to vector<1xf32>
    %12 = vector.shape_cast %11 : vector<1xf32> to vector<1x1x1xf32>
    %13 = vector.extract %12[0, 0, 0] : f32 from vector<1x1x1xf32>
    %cst_4 = arith.constant 2.560000e+02 : f32
    %14 = arith.divf %13, %cst_4 : f32
    %15 = vector.broadcast %6 : f32 to vector<16x16xf32>
    %16 = arith.subf %1, %15 : vector<16x16xf32>
    %cst_5 = arith.constant 9.99999993E-9 : f32
    %17 = arith.addf %14, %cst_5 : f32
    %18 = math.rsqrt %17 : f32
    %19 = vector.broadcast %18 : f32 to vector<16x16xf32>
    %20 = arith.mulf %16, %19 : vector<16x16xf32>
    %c0_6 = arith.constant 0 : index
    %c0_7 = arith.constant 0 : index
    %21 = vector.load %arg2[%c0_6, %c0_7] : memref<16x1xf32, #tpu.memory_space<vmem>>, vector<16x1xf32>
    %22 = vector.broadcast %21 : vector<16x1xf32> to vector<16x16xf32>
    %23 = arith.mulf %20, %22 : vector<16x16xf32>
    %c0_8 = arith.constant 0 : index
    %c0_9 = arith.constant 0 : index
    %24 = vector.load %arg3[%c0_8, %c0_9] : memref<16x1xf32, #tpu.memory_space<vmem>>, vector<16x1xf32>
    %25 = vector.broadcast %24 : vector<16x1xf32> to vector<16x16xf32>
    %26 = arith.addf %23, %25 : vector<16x16xf32>
    %c0_10 = arith.constant 0 : index
    %c0_11 = arith.constant 0 : index
    %c0_12 = arith.constant 0 : index
    %27 = vector.load %arg4[%c0_10, %c0_11, %c0_12] : memref<1x16x16xf32, #tpu.memory_space<vmem>>, vector<1x16x16xf32>
    %28 = vector.shape_cast %27 : vector<1x16x16xf32> to vector<16x16xf32>
    %29 = vector.shape_cast %26 : vector<16x16xf32> to vector<1x16x16xf32>
    tpu.vector_store %arg4[%c0_10, %c0_11, %c0_12], %29 {strides = array<i32>} : memref<1x16x16xf32, #tpu.memory_space<vmem>>, vector<1x16x16xf32>,
    return
  }
  func.func @transform_0(%arg0: i32) -> (i32, i32, i32) {
    %c0_i32 = arith.constant 0 : i32
    %c0_i32_0 = arith.constant 0 : i32
    %c0_i32_1 = arith.constant 0 : i32
    return %arg0, %c0_i32, %c0_i32_0 : i32, i32, i32
  }
  func.func @transform_1(%arg0: i32) -> (i32, i32) {
    %c0_i32 = arith.constant 0 : i32
    %c0_i32_0 = arith.constant 0 : i32
    %c0_i32_1 = arith.constant 0 : i32
    return %c0_i32, %c0_i32_0 : i32, i32
  }
  func.func @transform_2(%arg0: i32) -> (i32, i32) {
    %c0_i32 = arith.constant 0 : i32
    %c0_i32_0 = arith.constant 0 : i32
    %c0_i32_1 = arith.constant 0 : i32
    return %c0_i32, %c0_i32_0 : i32, i32
  }
  func.func @transform_3(%arg0: i32) -> (i32, i32, i32) {
    %c0_i32 = arith.constant 0 : i32
    %c0_i32_0 = arith.constant 0 : i32
    %c0_i32_1 = arith.constant 0 : i32
    return %arg0, %c0_i32, %c0_i32_0 : i32, i32, i32
  }
}

module attributes {stable_mosaic.version = 11 : i64} {
  func.func @_mm_bias_kernel(%arg0: i32, %arg1: memref<96x8xf32, #tpu.memory_space<vmem>>, %arg2: memref<8x64xf32, #tpu.memory_space<vmem>>, %arg3: memref<1x64xf32, #tpu.memory_space<vmem>>, %arg4: memref<96x64xf32, #tpu.memory_space<vmem>>) attributes {dimension_semantics = [#tpu.dimension_semantics<parallel>], iteration_bounds = array<i64: 1>, scalar_prefetch = 0 : i64, scratch_operands = 0 : i64, tpu.core_type = #tpu.core_type<tc>, window_params = [{transform_indices = @transform_0, window_bounds = array<i64: 96, 8>}, {pipeline_mode = #tpu.pipeline_mode<synchronous>, transform_indices = @transform_1, window_bounds = array<i64: 8, 64>}, {pipeline_mode = #tpu.pipeline_mode<synchronous>, transform_indices = @transform_2, window_bounds = array<i64: 1, 64>}, {transform_indices = @transform_3, window_bounds = array<i64: 96, 64>}]} {
    %c0 = arith.constant 0 : index
    %c0_0 = arith.constant 0 : index
    %0 = vector.load %arg1[%c0, %c0_0] : memref<96x8xf32, #tpu.memory_space<vmem>>, vector<96x8xf32>
    %c0_1 = arith.constant 0 : index
    %c0_2 = arith.constant 0 : index
    %1 = vector.load %arg2[%c0_1, %c0_2] : memref<8x64xf32, #tpu.memory_space<vmem>>, vector<8x64xf32>
    %cst = arith.constant dense<0.000000e+00> : vector<96x64xf32>
    %2 = tpu.matmul %0, %1, %cst {dimension_numbers = #tpu.dot_dimension_numbers<[1], [0], [0], [1], [0, 0, 1, 1], [], []>} : vector<96x8xf32>, vector<8x64xf32>, vector<96x64xf32> -> vector<96x64xf32>
    %c0_3 = arith.constant 0 : index
    %c0_4 = arith.constant 0 : index
    %3 = vector.load %arg3[%c0_3, %c0_4] : memref<1x64xf32, #tpu.memory_space<vmem>>, vector<1x64xf32>
    %4 = vector.broadcast %3 : vector<1x64xf32> to vector<96x64xf32>
    %5 = arith.addf %2, %4 : vector<96x64xf32>
    %c0_5 = arith.constant 0 : index
    %c0_6 = arith.constant 0 : index
    %6 = vector.load %arg4[%c0_5, %c0_6] : memref<96x64xf32, #tpu.memory_space<vmem>>, vector<96x64xf32>
    tpu.vector_store %arg4[%c0_5, %c0_6], %5 {strides = array<i32>} : memref<96x64xf32, #tpu.memory_space<vmem>>, vector<96x64xf32>,
    return
  }
  func.func @transform_0(%arg0: i32) -> (i32, i32) {
    %c0_i32 = arith.constant 0 : i32
    %c0_i32_0 = arith.constant 0 : i32
    return %arg0, %c0_i32 : i32, i32
  }
  func.func @transform_1(%arg0: i32) -> (i32, i32) {
    %c0_i32 = arith.constant 0 : i32
    %c0_i32_0 = arith.constant 0 : i32
    %c0_i32_1 = arith.constant 0 : i32
    return %c0_i32, %c0_i32_0 : i32, i32
  }
  func.func @transform_2(%arg0: i32) -> (i32, i32) {
    %c0_i32 = arith.constant 0 : i32
    %c0_i32_0 = arith.constant 0 : i32
    %c0_i32_1 = arith.constant 0 : i32
    return %c0_i32, %c0_i32_0 : i32, i32
  }
  func.func @transform_3(%arg0: i32) -> (i32, i32) {
    %c0_i32 = arith.constant 0 : i32
    %c0_i32_0 = arith.constant 0 : i32
    return %arg0, %c0_i32 : i32, i32
  }
}

module attributes {stable_mosaic.version = 11 : i64} {
  func.func @_lstm_step_kernel(%arg0: i32, %arg1: memref<1x12x64xf32, #tpu.memory_space<vmem>>, %arg2: memref<16x64xf32, #tpu.memory_space<vmem>>, %arg3: memref<16x8xf32, #tpu.memory_space<vmem>>, %arg4: memref<1x8xf32, #tpu.memory_space<vmem>>, %arg5: memref<1x12x8xf32, #tpu.memory_space<vmem>>, %arg6: memref<12x16xf32, #tpu.memory_space<vmem>>, %arg7: memref<12x16xf32, #tpu.memory_space<vmem>>) attributes {dimension_semantics = [#tpu.dimension_semantics<arbitrary>], iteration_bounds = array<i64: 8>, scalar_prefetch = 0 : i64, scratch_operands = 2 : i64, tpu.core_type = #tpu.core_type<tc>, window_params = [{transform_indices = @transform_0, window_bounds = array<i64: 1, 12, 64>}, {pipeline_mode = #tpu.pipeline_mode<synchronous>, transform_indices = @transform_1, window_bounds = array<i64: 16, 64>}, {pipeline_mode = #tpu.pipeline_mode<synchronous>, transform_indices = @transform_2, window_bounds = array<i64: 16, 8>}, {pipeline_mode = #tpu.pipeline_mode<synchronous>, transform_indices = @transform_3, window_bounds = array<i64: 1, 8>}, {transform_indices = @transform_4, window_bounds = array<i64: 1, 12, 8>}]} {
    %c0_i32 = arith.constant 0 : i32
    %0 = arith.cmpi eq, %arg0, %c0_i32 : i32
    %1 = arith.extui %0 : i1 to i32
    %c0_i32_0 = arith.constant 0 : i32
    %2 = arith.cmpi ne, %1, %c0_i32_0 : i32
    scf.if %2 {
      %cst_24 = arith.constant 0.000000e+00 : f32
      %45 = vector.broadcast %cst_24 : f32 to vector<12x16xf32>
      %c0_25 = arith.constant 0 : index
      %c0_26 = arith.constant 0 : index
      %46 = vector.load %arg6[%c0_25, %c0_26] : memref<12x16xf32, #tpu.memory_space<vmem>>, vector<12x16xf32>
      tpu.vector_store %arg6[%c0_25, %c0_26], %45 {strides = array<i32>} : memref<12x16xf32, #tpu.memory_space<vmem>>, vector<12x16xf32>,
      %cst_27 = arith.constant 0.000000e+00 : f32
      %47 = vector.broadcast %cst_27 : f32 to vector<12x16xf32>
      %c0_28 = arith.constant 0 : index
      %c0_29 = arith.constant 0 : index
      %48 = vector.load %arg7[%c0_28, %c0_29] : memref<12x16xf32, #tpu.memory_space<vmem>>, vector<12x16xf32>
      tpu.vector_store %arg7[%c0_28, %c0_29], %47 {strides = array<i32>} : memref<12x16xf32, #tpu.memory_space<vmem>>, vector<12x16xf32>,
    } else {
    }
    %c0 = arith.constant 0 : index
    %c0_1 = arith.constant 0 : index
    %c0_2 = arith.constant 0 : index
    %3 = vector.load %arg1[%c0, %c0_1, %c0_2] : memref<1x12x64xf32, #tpu.memory_space<vmem>>, vector<1x12x64xf32>
    %4 = vector.shape_cast %3 : vector<1x12x64xf32> to vector<12x64xf32>
    %c0_3 = arith.constant 0 : index
    %c0_4 = arith.constant 0 : index
    %5 = vector.load %arg6[%c0_3, %c0_4] : memref<12x16xf32, #tpu.memory_space<vmem>>, vector<12x16xf32>
    %c0_5 = arith.constant 0 : index
    %c0_6 = arith.constant 0 : index
    %6 = vector.load %arg2[%c0_5, %c0_6] : memref<16x64xf32, #tpu.memory_space<vmem>>, vector<16x64xf32>
    %cst = arith.constant dense<0.000000e+00> : vector<12x64xf32>
    %7 = tpu.matmul %5, %6, %cst {dimension_numbers = #tpu.dot_dimension_numbers<[1], [0], [0], [1], [0, 0, 1, 1], [], []>} : vector<12x16xf32>, vector<16x64xf32>, vector<12x64xf32> -> vector<12x64xf32>
    %8 = arith.addf %4, %7 : vector<12x64xf32>
    %9 = vector.extract_strided_slice %8 {offsets = [0, 0], sizes = [12, 16], strides = [1, 1]} : vector<12x64xf32> to vector<12x16xf32>
    %10 = arith.negf %9 : vector<12x16xf32>
    %11 = math.exp %10 : vector<12x16xf32>
    %cst_7 = arith.constant 1.000000e+00 : f32
    %12 = vector.broadcast %cst_7 : f32 to vector<12x16xf32>
    %13 = arith.addf %12, %11 : vector<12x16xf32>
    %14 = arith.divf %12, %13 : vector<12x16xf32>
    %15 = vector.extract_strided_slice %8 {offsets = [0, 16], sizes = [12, 16], strides = [1, 1]} : vector<12x64xf32> to vector<12x16xf32>
    %16 = arith.negf %15 : vector<12x16xf32>
    %17 = math.exp %16 : vector<12x16xf32>
    %cst_8 = arith.constant 1.000000e+00 : f32
    %18 = vector.broadcast %cst_8 : f32 to vector<12x16xf32>
    %19 = arith.addf %18, %17 : vector<12x16xf32>
    %20 = arith.divf %18, %19 : vector<12x16xf32>
    %21 = vector.extract_strided_slice %8 {offsets = [0, 32], sizes = [12, 16], strides = [1, 1]} : vector<12x64xf32> to vector<12x16xf32>
    %22 = math.tanh %21 : vector<12x16xf32>
    %23 = vector.extract_strided_slice %8 {offsets = [0, 48], sizes = [12, 16], strides = [1, 1]} : vector<12x64xf32> to vector<12x16xf32>
    %24 = arith.negf %23 : vector<12x16xf32>
    %25 = math.exp %24 : vector<12x16xf32>
    %cst_9 = arith.constant 1.000000e+00 : f32
    %26 = vector.broadcast %cst_9 : f32 to vector<12x16xf32>
    %27 = arith.addf %26, %25 : vector<12x16xf32>
    %28 = arith.divf %26, %27 : vector<12x16xf32>
    %c0_10 = arith.constant 0 : index
    %c0_11 = arith.constant 0 : index
    %29 = vector.load %arg7[%c0_10, %c0_11] : memref<12x16xf32, #tpu.memory_space<vmem>>, vector<12x16xf32>
    %30 = arith.mulf %20, %29 : vector<12x16xf32>
    %31 = arith.mulf %14, %22 : vector<12x16xf32>
    %32 = arith.addf %30, %31 : vector<12x16xf32>
    %33 = math.tanh %32 : vector<12x16xf32>
    %34 = arith.mulf %28, %33 : vector<12x16xf32>
    %c0_12 = arith.constant 0 : index
    %c0_13 = arith.constant 0 : index
    %35 = vector.load %arg7[%c0_12, %c0_13] : memref<12x16xf32, #tpu.memory_space<vmem>>, vector<12x16xf32>
    tpu.vector_store %arg7[%c0_12, %c0_13], %32 {strides = array<i32>} : memref<12x16xf32, #tpu.memory_space<vmem>>, vector<12x16xf32>,
    %c0_14 = arith.constant 0 : index
    %c0_15 = arith.constant 0 : index
    %36 = vector.load %arg6[%c0_14, %c0_15] : memref<12x16xf32, #tpu.memory_space<vmem>>, vector<12x16xf32>
    tpu.vector_store %arg6[%c0_14, %c0_15], %34 {strides = array<i32>} : memref<12x16xf32, #tpu.memory_space<vmem>>, vector<12x16xf32>,
    %c0_16 = arith.constant 0 : index
    %c0_17 = arith.constant 0 : index
    %37 = vector.load %arg3[%c0_16, %c0_17] : memref<16x8xf32, #tpu.memory_space<vmem>>, vector<16x8xf32>
    %cst_18 = arith.constant dense<0.000000e+00> : vector<12x8xf32>
    %38 = tpu.matmul %34, %37, %cst_18 {dimension_numbers = #tpu.dot_dimension_numbers<[1], [0], [0], [1], [0, 0, 1, 1], [], []>} : vector<12x16xf32>, vector<16x8xf32>, vector<12x8xf32> -> vector<12x8xf32>
    %c0_19 = arith.constant 0 : index
    %c0_20 = arith.constant 0 : index
    %39 = vector.load %arg4[%c0_19, %c0_20] : memref<1x8xf32, #tpu.memory_space<vmem>>, vector<1x8xf32>
    %40 = vector.broadcast %39 : vector<1x8xf32> to vector<12x8xf32>
    %41 = arith.addf %38, %40 : vector<12x8xf32>
    %c0_21 = arith.constant 0 : index
    %c0_22 = arith.constant 0 : index
    %c0_23 = arith.constant 0 : index
    %42 = vector.load %arg5[%c0_21, %c0_22, %c0_23] : memref<1x12x8xf32, #tpu.memory_space<vmem>>, vector<1x12x8xf32>
    %43 = vector.shape_cast %42 : vector<1x12x8xf32> to vector<12x8xf32>
    %44 = vector.shape_cast %41 : vector<12x8xf32> to vector<1x12x8xf32>
    tpu.vector_store %arg5[%c0_21, %c0_22, %c0_23], %44 {strides = array<i32>} : memref<1x12x8xf32, #tpu.memory_space<vmem>>, vector<1x12x8xf32>,
    return
  }
  func.func @transform_0(%arg0: i32) -> (i32, i32, i32) {
    %c0_i32 = arith.constant 0 : i32
    %c0_i32_0 = arith.constant 0 : i32
    %c0_i32_1 = arith.constant 0 : i32
    return %arg0, %c0_i32, %c0_i32_0 : i32, i32, i32
  }
  func.func @transform_1(%arg0: i32) -> (i32, i32) {
    %c0_i32 = arith.constant 0 : i32
    %c0_i32_0 = arith.constant 0 : i32
    %c0_i32_1 = arith.constant 0 : i32
    return %c0_i32, %c0_i32_0 : i32, i32
  }
  func.func @transform_2(%arg0: i32) -> (i32, i32) {
    %c0_i32 = arith.constant 0 : i32
    %c0_i32_0 = arith.constant 0 : i32
    %c0_i32_1 = arith.constant 0 : i32
    return %c0_i32, %c0_i32_0 : i32, i32
  }
  func.func @transform_3(%arg0: i32) -> (i32, i32) {
    %c0_i32 = arith.constant 0 : i32
    %c0_i32_0 = arith.constant 0 : i32
    %c0_i32_1 = arith.constant 0 : i32
    return %c0_i32, %c0_i32_0 : i32, i32
  }
  func.func @transform_4(%arg0: i32) -> (i32, i32, i32) {
    %c0_i32 = arith.constant 0 : i32
    %c0_i32_0 = arith.constant 0 : i32
    %c0_i32_1 = arith.constant 0 : i32
    return %arg0, %c0_i32, %c0_i32_0 : i32, i32, i32
  }
}

module attributes {stable_mosaic.version = 11 : i64} {
  func.func @_gn_res_kernel(%arg0: i32, %arg1: memref<1x8x48xf32, #tpu.memory_space<vmem>>, %arg2: memref<1x8x48xf32, #tpu.memory_space<vmem>>, %arg3: memref<8x1xf32, #tpu.memory_space<vmem>>, %arg4: memref<8x1xf32, #tpu.memory_space<vmem>>, %arg5: memref<1x8x48xf32, #tpu.memory_space<vmem>>) attributes {dimension_semantics = [#tpu.dimension_semantics<parallel>], iteration_bounds = array<i64: 2>, scalar_prefetch = 0 : i64, scratch_operands = 0 : i64, tpu.core_type = #tpu.core_type<tc>, window_params = [{transform_indices = @transform_0, window_bounds = array<i64: 1, 8, 48>}, {transform_indices = @transform_1, window_bounds = array<i64: 1, 8, 48>}, {pipeline_mode = #tpu.pipeline_mode<synchronous>, transform_indices = @transform_2, window_bounds = array<i64: 8, 1>}, {pipeline_mode = #tpu.pipeline_mode<synchronous>, transform_indices = @transform_3, window_bounds = array<i64: 8, 1>}, {transform_indices = @transform_4, window_bounds = array<i64: 1, 8, 48>}]} {
    %c0 = arith.constant 0 : index
    %c0_0 = arith.constant 0 : index
    %c0_1 = arith.constant 0 : index
    %0 = vector.load %arg1[%c0, %c0_0, %c0_1] : memref<1x8x48xf32, #tpu.memory_space<vmem>>, vector<1x8x48xf32>
    %1 = vector.shape_cast %0 : vector<1x8x48xf32> to vector<8x48xf32>
    %2 = vector.shape_cast %1 : vector<8x48xf32> to vector<1x8x48xf32>
    %cst = arith.constant dense<0.000000e+00> : vector<1xf32>
    %3 = vector.multi_reduction <add>, %2, %cst [1, 2] : vector<1x8x48xf32> to vector<1xf32>
    %4 = vector.shape_cast %3 : vector<1xf32> to vector<1x1x1xf32>
    %5 = vector.extract %4[0, 0, 0] : f32 from vector<1x1x1xf32>
    %cst_2 = arith.constant 3.840000e+02 : f32
    %6 = arith.divf %5, %cst_2 : f32
    %7 = vector.broadcast %6 : f32 to vector<8x48xf32>
    %8 = arith.subf %1, %7 : vector<8x48xf32>
    %9 = arith.mulf %8, %8 : vector<8x48xf32>
    %10 = vector.shape_cast %9 : vector<8x48xf32> to vector<1x8x48xf32>
    %cst_3 = arith.constant dense<0.000000e+00> : vector<1xf32>
    %11 = vector.multi_reduction <add>, %10, %cst_3 [1, 2] : vector<1x8x48xf32> to vector<1xf32>
    %12 = vector.shape_cast %11 : vector<1xf32> to vector<1x1x1xf32>
    %13 = vector.extract %12[0, 0, 0] : f32 from vector<1x1x1xf32>
    %cst_4 = arith.constant 3.840000e+02 : f32
    %14 = arith.divf %13, %cst_4 : f32
    %15 = vector.broadcast %6 : f32 to vector<8x48xf32>
    %16 = arith.subf %1, %15 : vector<8x48xf32>
    %cst_5 = arith.constant 9.99999993E-9 : f32
    %17 = arith.addf %14, %cst_5 : f32
    %18 = math.rsqrt %17 : f32
    %19 = vector.broadcast %18 : f32 to vector<8x48xf32>
    %20 = arith.mulf %16, %19 : vector<8x48xf32>
    %c0_6 = arith.constant 0 : index
    %c0_7 = arith.constant 0 : index
    %21 = vector.load %arg3[%c0_6, %c0_7] : memref<8x1xf32, #tpu.memory_space<vmem>>, vector<8x1xf32>
    %22 = vector.broadcast %21 : vector<8x1xf32> to vector<8x48xf32>
    %23 = arith.mulf %20, %22 : vector<8x48xf32>
    %c0_8 = arith.constant 0 : index
    %c0_9 = arith.constant 0 : index
    %24 = vector.load %arg4[%c0_8, %c0_9] : memref<8x1xf32, #tpu.memory_space<vmem>>, vector<8x1xf32>
    %25 = vector.broadcast %24 : vector<8x1xf32> to vector<8x48xf32>
    %26 = arith.addf %23, %25 : vector<8x48xf32>
    %c0_10 = arith.constant 0 : index
    %c0_11 = arith.constant 0 : index
    %c0_12 = arith.constant 0 : index
    %27 = vector.load %arg2[%c0_10, %c0_11, %c0_12] : memref<1x8x48xf32, #tpu.memory_space<vmem>>, vector<1x8x48xf32>
    %28 = vector.shape_cast %27 : vector<1x8x48xf32> to vector<8x48xf32>
    %29 = arith.addf %26, %28 : vector<8x48xf32>
    %c0_13 = arith.constant 0 : index
    %c0_14 = arith.constant 0 : index
    %c0_15 = arith.constant 0 : index
    %30 = vector.load %arg5[%c0_13, %c0_14, %c0_15] : memref<1x8x48xf32, #tpu.memory_space<vmem>>, vector<1x8x48xf32>
    %31 = vector.shape_cast %30 : vector<1x8x48xf32> to vector<8x48xf32>
    %32 = vector.shape_cast %29 : vector<8x48xf32> to vector<1x8x48xf32>
    tpu.vector_store %arg5[%c0_13, %c0_14, %c0_15], %32 {strides = array<i32>} : memref<1x8x48xf32, #tpu.memory_space<vmem>>, vector<1x8x48xf32>,
    return
  }
  func.func @transform_0(%arg0: i32) -> (i32, i32, i32) {
    %c0_i32 = arith.constant 0 : i32
    %c0_i32_0 = arith.constant 0 : i32
    %c0_i32_1 = arith.constant 0 : i32
    return %arg0, %c0_i32, %c0_i32_0 : i32, i32, i32
  }
  func.func @transform_1(%arg0: i32) -> (i32, i32, i32) {
    %c0_i32 = arith.constant 0 : i32
    %c0_i32_0 = arith.constant 0 : i32
    %c0_i32_1 = arith.constant 0 : i32
    return %arg0, %c0_i32, %c0_i32_0 : i32, i32, i32
  }
  func.func @transform_2(%arg0: i32) -> (i32, i32) {
    %c0_i32 = arith.constant 0 : i32
    %c0_i32_0 = arith.constant 0 : i32
    %c0_i32_1 = arith.constant 0 : i32
    return %c0_i32, %c0_i32_0 : i32, i32
  }
  func.func @transform_3(%arg0: i32) -> (i32, i32) {
    %c0_i32 = arith.constant 0 : i32
    %c0_i32_0 = arith.constant 0 : i32
    %c0_i32_1 = arith.constant 0 : i32
    return %c0_i32, %c0_i32_0 : i32, i32
  }
  func.func @transform_4(%arg0: i32) -> (i32, i32, i32) {
    %c0_i32 = arith.constant 0 : i32
    %c0_i32_0 = arith.constant 0 : i32
    %c0_i32_1 = arith.constant 0 : i32
    return %arg0, %c0_i32, %c0_i32_0 : i32, i32, i32
  }
}

module attributes {stable_mosaic.version = 11 : i64} {
  func.func @_lstm_step_kernel(%arg0: i32, %arg1: memref<1x16x64xf32, #tpu.memory_space<vmem>>, %arg2: memref<16x64xf32, #tpu.memory_space<vmem>>, %arg3: memref<16x8xf32, #tpu.memory_space<vmem>>, %arg4: memref<1x8xf32, #tpu.memory_space<vmem>>, %arg5: memref<1x16x8xf32, #tpu.memory_space<vmem>>, %arg6: memref<16x16xf32, #tpu.memory_space<vmem>>, %arg7: memref<16x16xf32, #tpu.memory_space<vmem>>) attributes {dimension_semantics = [#tpu.dimension_semantics<arbitrary>], iteration_bounds = array<i64: 6>, scalar_prefetch = 0 : i64, scratch_operands = 2 : i64, tpu.core_type = #tpu.core_type<tc>, window_params = [{transform_indices = @transform_0, window_bounds = array<i64: 1, 16, 64>}, {pipeline_mode = #tpu.pipeline_mode<synchronous>, transform_indices = @transform_1, window_bounds = array<i64: 16, 64>}, {pipeline_mode = #tpu.pipeline_mode<synchronous>, transform_indices = @transform_2, window_bounds = array<i64: 16, 8>}, {pipeline_mode = #tpu.pipeline_mode<synchronous>, transform_indices = @transform_3, window_bounds = array<i64: 1, 8>}, {transform_indices = @transform_4, window_bounds = array<i64: 1, 16, 8>}]} {
    %c0_i32 = arith.constant 0 : i32
    %0 = arith.cmpi eq, %arg0, %c0_i32 : i32
    %1 = arith.extui %0 : i1 to i32
    %c0_i32_0 = arith.constant 0 : i32
    %2 = arith.cmpi ne, %1, %c0_i32_0 : i32
    scf.if %2 {
      %cst_24 = arith.constant 0.000000e+00 : f32
      %45 = vector.broadcast %cst_24 : f32 to vector<16x16xf32>
      %c0_25 = arith.constant 0 : index
      %c0_26 = arith.constant 0 : index
      %46 = vector.load %arg6[%c0_25, %c0_26] : memref<16x16xf32, #tpu.memory_space<vmem>>, vector<16x16xf32>
      tpu.vector_store %arg6[%c0_25, %c0_26], %45 {strides = array<i32>} : memref<16x16xf32, #tpu.memory_space<vmem>>, vector<16x16xf32>,
      %cst_27 = arith.constant 0.000000e+00 : f32
      %47 = vector.broadcast %cst_27 : f32 to vector<16x16xf32>
      %c0_28 = arith.constant 0 : index
      %c0_29 = arith.constant 0 : index
      %48 = vector.load %arg7[%c0_28, %c0_29] : memref<16x16xf32, #tpu.memory_space<vmem>>, vector<16x16xf32>
      tpu.vector_store %arg7[%c0_28, %c0_29], %47 {strides = array<i32>} : memref<16x16xf32, #tpu.memory_space<vmem>>, vector<16x16xf32>,
    } else {
    }
    %c0 = arith.constant 0 : index
    %c0_1 = arith.constant 0 : index
    %c0_2 = arith.constant 0 : index
    %3 = vector.load %arg1[%c0, %c0_1, %c0_2] : memref<1x16x64xf32, #tpu.memory_space<vmem>>, vector<1x16x64xf32>
    %4 = vector.shape_cast %3 : vector<1x16x64xf32> to vector<16x64xf32>
    %c0_3 = arith.constant 0 : index
    %c0_4 = arith.constant 0 : index
    %5 = vector.load %arg6[%c0_3, %c0_4] : memref<16x16xf32, #tpu.memory_space<vmem>>, vector<16x16xf32>
    %c0_5 = arith.constant 0 : index
    %c0_6 = arith.constant 0 : index
    %6 = vector.load %arg2[%c0_5, %c0_6] : memref<16x64xf32, #tpu.memory_space<vmem>>, vector<16x64xf32>
    %cst = arith.constant dense<0.000000e+00> : vector<16x64xf32>
    %7 = tpu.matmul %5, %6, %cst {dimension_numbers = #tpu.dot_dimension_numbers<[1], [0], [0], [1], [0, 0, 1, 1], [], []>} : vector<16x16xf32>, vector<16x64xf32>, vector<16x64xf32> -> vector<16x64xf32>
    %8 = arith.addf %4, %7 : vector<16x64xf32>
    %9 = vector.extract_strided_slice %8 {offsets = [0, 0], sizes = [16, 16], strides = [1, 1]} : vector<16x64xf32> to vector<16x16xf32>
    %10 = arith.negf %9 : vector<16x16xf32>
    %11 = math.exp %10 : vector<16x16xf32>
    %cst_7 = arith.constant 1.000000e+00 : f32
    %12 = vector.broadcast %cst_7 : f32 to vector<16x16xf32>
    %13 = arith.addf %12, %11 : vector<16x16xf32>
    %14 = arith.divf %12, %13 : vector<16x16xf32>
    %15 = vector.extract_strided_slice %8 {offsets = [0, 16], sizes = [16, 16], strides = [1, 1]} : vector<16x64xf32> to vector<16x16xf32>
    %16 = arith.negf %15 : vector<16x16xf32>
    %17 = math.exp %16 : vector<16x16xf32>
    %cst_8 = arith.constant 1.000000e+00 : f32
    %18 = vector.broadcast %cst_8 : f32 to vector<16x16xf32>
    %19 = arith.addf %18, %17 : vector<16x16xf32>
    %20 = arith.divf %18, %19 : vector<16x16xf32>
    %21 = vector.extract_strided_slice %8 {offsets = [0, 32], sizes = [16, 16], strides = [1, 1]} : vector<16x64xf32> to vector<16x16xf32>
    %22 = math.tanh %21 : vector<16x16xf32>
    %23 = vector.extract_strided_slice %8 {offsets = [0, 48], sizes = [16, 16], strides = [1, 1]} : vector<16x64xf32> to vector<16x16xf32>
    %24 = arith.negf %23 : vector<16x16xf32>
    %25 = math.exp %24 : vector<16x16xf32>
    %cst_9 = arith.constant 1.000000e+00 : f32
    %26 = vector.broadcast %cst_9 : f32 to vector<16x16xf32>
    %27 = arith.addf %26, %25 : vector<16x16xf32>
    %28 = arith.divf %26, %27 : vector<16x16xf32>
    %c0_10 = arith.constant 0 : index
    %c0_11 = arith.constant 0 : index
    %29 = vector.load %arg7[%c0_10, %c0_11] : memref<16x16xf32, #tpu.memory_space<vmem>>, vector<16x16xf32>
    %30 = arith.mulf %20, %29 : vector<16x16xf32>
    %31 = arith.mulf %14, %22 : vector<16x16xf32>
    %32 = arith.addf %30, %31 : vector<16x16xf32>
    %33 = math.tanh %32 : vector<16x16xf32>
    %34 = arith.mulf %28, %33 : vector<16x16xf32>
    %c0_12 = arith.constant 0 : index
    %c0_13 = arith.constant 0 : index
    %35 = vector.load %arg7[%c0_12, %c0_13] : memref<16x16xf32, #tpu.memory_space<vmem>>, vector<16x16xf32>
    tpu.vector_store %arg7[%c0_12, %c0_13], %32 {strides = array<i32>} : memref<16x16xf32, #tpu.memory_space<vmem>>, vector<16x16xf32>,
    %c0_14 = arith.constant 0 : index
    %c0_15 = arith.constant 0 : index
    %36 = vector.load %arg6[%c0_14, %c0_15] : memref<16x16xf32, #tpu.memory_space<vmem>>, vector<16x16xf32>
    tpu.vector_store %arg6[%c0_14, %c0_15], %34 {strides = array<i32>} : memref<16x16xf32, #tpu.memory_space<vmem>>, vector<16x16xf32>,
    %c0_16 = arith.constant 0 : index
    %c0_17 = arith.constant 0 : index
    %37 = vector.load %arg3[%c0_16, %c0_17] : memref<16x8xf32, #tpu.memory_space<vmem>>, vector<16x8xf32>
    %cst_18 = arith.constant dense<0.000000e+00> : vector<16x8xf32>
    %38 = tpu.matmul %34, %37, %cst_18 {dimension_numbers = #tpu.dot_dimension_numbers<[1], [0], [0], [1], [0, 0, 1, 1], [], []>} : vector<16x16xf32>, vector<16x8xf32>, vector<16x8xf32> -> vector<16x8xf32>
    %c0_19 = arith.constant 0 : index
    %c0_20 = arith.constant 0 : index
    %39 = vector.load %arg4[%c0_19, %c0_20] : memref<1x8xf32, #tpu.memory_space<vmem>>, vector<1x8xf32>
    %40 = vector.broadcast %39 : vector<1x8xf32> to vector<16x8xf32>
    %41 = arith.addf %38, %40 : vector<16x8xf32>
    %c0_21 = arith.constant 0 : index
    %c0_22 = arith.constant 0 : index
    %c0_23 = arith.constant 0 : index
    %42 = vector.load %arg5[%c0_21, %c0_22, %c0_23] : memref<1x16x8xf32, #tpu.memory_space<vmem>>, vector<1x16x8xf32>
    %43 = vector.shape_cast %42 : vector<1x16x8xf32> to vector<16x8xf32>
    %44 = vector.shape_cast %41 : vector<16x8xf32> to vector<1x16x8xf32>
    tpu.vector_store %arg5[%c0_21, %c0_22, %c0_23], %44 {strides = array<i32>} : memref<1x16x8xf32, #tpu.memory_space<vmem>>, vector<1x16x8xf32>,
    return
  }
  func.func @transform_0(%arg0: i32) -> (i32, i32, i32) {
    %c0_i32 = arith.constant 0 : i32
    %c0_i32_0 = arith.constant 0 : i32
    %c0_i32_1 = arith.constant 0 : i32
    return %arg0, %c0_i32, %c0_i32_0 : i32, i32, i32
  }
  func.func @transform_1(%arg0: i32) -> (i32, i32) {
    %c0_i32 = arith.constant 0 : i32
    %c0_i32_0 = arith.constant 0 : i32
    %c0_i32_1 = arith.constant 0 : i32
    return %c0_i32, %c0_i32_0 : i32, i32
  }
  func.func @transform_2(%arg0: i32) -> (i32, i32) {
    %c0_i32 = arith.constant 0 : i32
    %c0_i32_0 = arith.constant 0 : i32
    %c0_i32_1 = arith.constant 0 : i32
    return %c0_i32, %c0_i32_0 : i32, i32
  }
  func.func @transform_3(%arg0: i32) -> (i32, i32) {
    %c0_i32 = arith.constant 0 : i32
    %c0_i32_0 = arith.constant 0 : i32
    %c0_i32_1 = arith.constant 0 : i32
    return %c0_i32, %c0_i32_0 : i32, i32
  }
  func.func @transform_4(%arg0: i32) -> (i32, i32, i32) {
    %c0_i32 = arith.constant 0 : i32
    %c0_i32_0 = arith.constant 0 : i32
    %c0_i32_1 = arith.constant 0 : i32
    return %arg0, %c0_i32, %c0_i32_0 : i32, i32, i32
  }
}

module attributes {stable_mosaic.version = 11 : i64} {
  func.func @_prelu_wx_relu_kernel(%arg0: i32, %arg1: i32, %arg2: memref<1x1xf32, #tpu.memory_space<smem>>, %arg3: memref<16x8xf32, #tpu.memory_space<vmem>>, %arg4: memref<1x8x16xf32, #tpu.memory_space<vmem>>, %arg5: memref<1x16x16xf32, #tpu.memory_space<vmem>>) attributes {dimension_semantics = [#tpu.dimension_semantics<parallel>, #tpu.dimension_semantics<parallel>], iteration_bounds = array<i64: 2, 1>, scalar_prefetch = 0 : i64, scratch_operands = 0 : i64, tpu.core_type = #tpu.core_type<tc>, window_params = [{transform_indices = @transform_0, window_bounds = array<i64: 1, 1>}, {pipeline_mode = #tpu.pipeline_mode<synchronous>, transform_indices = @transform_1, window_bounds = array<i64: 16, 8>}, {transform_indices = @transform_2, window_bounds = array<i64: 1, 8, 16>}, {transform_indices = @transform_3, window_bounds = array<i64: 1, 16, 16>}]} {
    %c0 = arith.constant 0 : index
    %c0_0 = arith.constant 0 : index
    %0 = memref.load %arg2[%c0, %c0_0] : memref<1x1xf32, #tpu.memory_space<smem>>
    %c0_1 = arith.constant 0 : index
    %c0_2 = arith.constant 0 : index
    %c0_3 = arith.constant 0 : index
    %1 = vector.load %arg4[%c0_1, %c0_2, %c0_3] : memref<1x8x16xf32, #tpu.memory_space<vmem>>, vector<1x8x16xf32>
    %2 = vector.shape_cast %1 : vector<1x8x16xf32> to vector<8x16xf32>
    %cst = arith.constant 0.000000e+00 : f32
    %3 = vector.broadcast %cst : f32 to vector<8x16xf32>
    %4 = arith.cmpf ogt, %2, %3 : vector<8x16xf32>
    %5 = vector.broadcast %0 : f32 to vector<8x16xf32>
    %6 = arith.mulf %5, %2 : vector<8x16xf32>
    %7 = arith.select %4, %2, %6 : vector<8x16xi1>, vector<8x16xf32>
    %c0_4 = arith.constant 0 : index
    %c0_5 = arith.constant 0 : index
    %8 = vector.load %arg3[%c0_4, %c0_5] : memref<16x8xf32, #tpu.memory_space<vmem>>, vector<16x8xf32>
    %cst_6 = arith.constant dense<0.000000e+00> : vector<16x16xf32>
    %9 = tpu.matmul %8, %7, %cst_6 {dimension_numbers = #tpu.dot_dimension_numbers<[1], [0], [0], [1], [0, 0, 1, 1], [], []>} : vector<16x8xf32>, vector<8x16xf32>, vector<16x16xf32> -> vector<16x16xf32>
    %cst_7 = arith.constant 0.000000e+00 : f32
    %10 = vector.broadcast %cst_7 : f32 to vector<16x16xf32>
    %11 = arith.maximumf %9, %10 : vector<16x16xf32>
    %c0_8 = arith.constant 0 : index
    %c0_9 = arith.constant 0 : index
    %c0_10 = arith.constant 0 : index
    %12 = vector.load %arg5[%c0_8, %c0_9, %c0_10] : memref<1x16x16xf32, #tpu.memory_space<vmem>>, vector<1x16x16xf32>
    %13 = vector.shape_cast %12 : vector<1x16x16xf32> to vector<16x16xf32>
    %14 = vector.shape_cast %11 : vector<16x16xf32> to vector<1x16x16xf32>
    tpu.vector_store %arg5[%c0_8, %c0_9, %c0_10], %14 {strides = array<i32>} : memref<1x16x16xf32, #tpu.memory_space<vmem>>, vector<1x16x16xf32>,
    return
  }
  func.func @transform_0(%arg0: i32, %arg1: i32) -> (i32, i32) {
    %c0_i32 = arith.constant 0 : i32
    %c0_i32_0 = arith.constant 0 : i32
    %c0_i32_1 = arith.constant 0 : i32
    return %c0_i32, %c0_i32_0 : i32, i32
  }
  func.func @transform_1(%arg0: i32, %arg1: i32) -> (i32, i32) {
    %c0_i32 = arith.constant 0 : i32
    %c0_i32_0 = arith.constant 0 : i32
    %c0_i32_1 = arith.constant 0 : i32
    return %c0_i32, %c0_i32_0 : i32, i32
  }
  func.func @transform_2(%arg0: i32, %arg1: i32) -> (i32, i32, i32) {
    %c0_i32 = arith.constant 0 : i32
    %c0_i32_0 = arith.constant 0 : i32
    return %arg0, %c0_i32, %arg1 : i32, i32, i32
  }
  func.func @transform_3(%arg0: i32, %arg1: i32) -> (i32, i32, i32) {
    %c0_i32 = arith.constant 0 : i32
    %c0_i32_0 = arith.constant 0 : i32
    return %arg0, %c0_i32, %arg1 : i32, i32, i32
  }
}

</mosaic_0001>

<bundles_post_ra>
// kernel: rnn_forward.17
= control target key start
LH: loop header
LB: loop body
LE: loop exit
PB: predicated region body
PF: predicated region fallthrough
CT: control target
= control target key end

     0   :  { %s422_s9 = smov 0   ;;  %s424_s10 = smov 0   ;;  %s455_s0 = inlined_call_operand.vmem [shape: f32[8,16], index: 0, kind: input, shape index: {}]   ;;  %s456_s1 = inlined_call_operand.vmem [shape: f32[2,16,16], index: 1, kind: input, shape index: {}]   ;;  %s457_s2 = inlined_call_operand.vmem [shape: f32[2,8,16], index: 2, kind: output, shape index: {}]  }
   0x1   :  { %s426_s11 = smov 0  }
   0x2 LB: > { %s24_s12 = sadd.s32 1, %s398_s10  ;;  %p332_p0 = scmp.ge.s32.totalorder %s402_s11, 1  ;;  %s402_s11 = sphi %s426_s11, %s12_s11   ;;  %s398_s10 = sphi %s424_s10, %s459_s10   ;;  %s394_s9 = sphi %s422_s9, %s458_s9  }
   0x3   : > { %p26_p1 = scmp.ge.s32.totalorder %s24_s12, 2  ;;  %p131_p2 = scmp.lt.s32.totalorder %s402_s11, 3 }
   0x5   : > { %s461_s12 = smov (%p26_p1, %s24_s12), 0  ;;  %p132_p3 = pnand %p332_p0, %p131_p2 }
   0x6   : > { %p158_p4 = scmp.lt.s32.totalorder (!%p132_p3), %s394_s9, 1  ;;  %v404_v0 = vmov (!%p132_p3), 0.0|0.0   ;;  %vm405_vm0 = vmmov (!%p132_p3), 0   ;;  %v406_v1 = vmov (!%p132_p3), 0.0   ;;  %v173_v5 = vld [vmem:[%s455_s0] sm:$0xff] (!%p132_p3)  ;;  %vm176_vm1 = vcmask (!%p132_p3), 130048  }
   0x7   : > { %135 = sbr.rel (%p132_p3) target bundleno = 236 (0xec), region = 28  ;;  %350 = vmatprep.subr.bf16.mxu0 (!%p132_p3), %v404_v0  ;;  %347 = vmatprep.mubr.msk.f32.mxu0 (!%p132_p3), %vm405_vm0, %v406_v1 }
   0xe   : > { %s463_s9 = smov (!%p158_p4, %s394_s9), 1 }
   0xf   : > { %s339_s13 = sshll.u32 %s463_s9, 4  ;;  %s335_s19 = sshll.u32 %s463_s9, 3 }
  0x10   : > { %s165_s16 = scalar_lea.vmem %s456_s1, %s339_s13  ;;  %s172_s22 = scalar_lea.vmem %s457_s2, %s335_s19 }
  0x11   : > { %v174_v2 = vld [vmem:[%s165_s16] sm:$0xff]  ;;  %v175_v3 = vld [vmem:[%s165_s16 + $0x8] sm:$0xff] }
  0x12   : > { %v351_v4 = vpack.c.bf16 %v175_v3, %v174_v2 }
  0x14   : > { %352 = vmatpush3.bf16.msra.mxu0 %v351_v4 }
  0x17   : > { %348 = vmatmul.mubr.msk.f32.vlgmr.msra.gmra.mrb[0].mxu0 %vm176_vm1, %v173_v5 }
  0xea   : > { %v246_v6 = vpop.f32.mrb[0].mxu0 }
  0xeb   : > { %250 = vst.msk [vmem:[%s172_s22] sm:$0xff] %vm176_vm1, %v246_v6  ;;  %v349_v7 = vpop.f32.mrb[1].mxu0 }
  0xec PF: > { %s12_s11 = sadd.s32 1, %s402_s11   ;;  %s458_s9 = smov %s398_s10 }
  0xed   : > { %p9_p5 = scmp.ge.s32.totalorder %s12_s11, 4   ;;  %s459_s10 = smov %s461_s12 }
  0xef   :  { %11 = sbr.rel (!%p9_p5) target bundleno = 2 (0x2), region = 58 }

// kernel: rnn_forward.18
= control target key start
LH: loop header
LB: loop body
LE: loop exit
PB: predicated region body
PF: predicated region fallthrough
CT: control target
= control target key end

     0   :  { %s598_s15 = smov 0   ;;  %s600_s16 = smov 0   ;;  %s640_s0 = inlined_call_operand.vmem [shape: f32[8,8], index: 0, kind: input, shape index: {}]   ;;  %s641_s1 = inlined_call_operand.vmem [shape: f32[8,8], index: 1, kind: input, shape index: {}]   ;;  %s642_s2 = inlined_call_operand.vmem [shape: f32[2,8,16], index: 2, kind: input, shape index: {}]   ;;  %s643_s3 = inlined_call_operand.vmem [shape: f32[2,8,16], index: 3, kind: input, shape index: {}]   ;;  %s644_s4 = inlined_call_operand.vmem [shape: f32[2,8,16], index: 4, kind: output, shape index: {}]  }
   0x1   :  { %s602_s17 = smov 0  }
   0x2 LB: > { %s26_s18 = sadd.s32 1, %s565_s16  ;;  %p498_p0 = scmp.ge.s32.totalorder %s569_s17, 1  ;;  %s569_s17 = sphi %s602_s17, %s14_s17   ;;  %s565_s16 = sphi %s600_s16, %s646_s16   ;;  %s561_s15 = sphi %s598_s15, %s645_s15  }
   0x3   : > { %p28_p1 = scmp.ge.s32.totalorder %s26_s18, 2  ;;  %p194_p2 = scmp.lt.s32.totalorder %s569_s17, 3 }
   0x5   : > { %s648_s18 = smov (%p28_p1, %s26_s18), 0  ;;  %p195_p3 = pnand %p498_p0, %p194_p2 }
   0x6   : > { %p231_p4 = scmp.lt.s32.totalorder (!%p195_p3), %s561_s15, 1  ;;  %v571_v0 = vmov (!%p195_p3), 0.0   ;;  %vm572_vm0 = vmmov (!%p195_p3), 0   ;;  %v254_v1 = vld [vmem:[%s641_s1] sm:$0xff] (!%p195_p3)  ;;  %vm256_vm1 = vcmask (!%p195_p3), 64512   ;;  %vm403_vm2 = vcmask (!%p195_p3), 130048  }
   0x7   : > { %198 = sbr.rel (%p195_p3) target bundleno = 235 (0xeb), region = 36  ;;  %510 = vmatprep.subr.mxu1 (!%p195_p3), %v571_v0  ;;  %515 = vmatprep.subr.mxu0 (!%p195_p3), %v571_v0  ;;  %v252_v3 = vld [vmem:[%s640_s0] sm:$0xff] (!%p195_p3) }
   0x8   : > { %512 = vmatprep.mubr.msk.f32.mxu1 (!%p195_p3), %vm572_vm0, %v571_v0  ;;  %517 = vmatprep.mubr.msk.f32.mxu0 (!%p195_p3), %vm572_vm0, %v571_v0 }
   0xe   : > { %s650_s15 = smov (!%p231_p4, %s561_s15), 1 }
   0xf   : > { %s499_s19 = sshll.u32 %s650_s15, 3 }
  0x10   : > { %s244_s22 = scalar_lea.vmem %s643_s3, %s499_s19  ;;  %s237_s27 = scalar_lea.vmem %s642_s2, %s499_s19 }
  0x11   : > { %v255_v2 = vld [vmem:[%s244_s22] sm:$0xff]  ;;  %s251_s6 = scalar_lea.vmem %s644_s4, %s499_s19 }
  0x12   : > { %511 = vmatpush3.msra.mxu1 %v255_v2  ;;  %v253_v4 = vld [vmem:[%s237_s27] sm:$0xff] }
  0x13   : > { %516 = vmatpush3.msra.mxu0 %v253_v4  ;;  %513 = vmatmul.mubr.msk.f32.vlgmr.msra.gmra.mrb[0].mxu1 %vm256_vm1, %v254_v1 }
  0x14   : > { %518 = vmatmul.mubr.msk.f32.vlgmr.msra.gmra.mrb[0].mxu0 %vm256_vm1, %v252_v3 }
  0xe6   : > { %v326_v5 = vpop.f32.mrb[0].mxu1 }
  0xe7   : > { %v399_v6 = vpop.f32.mrb[0].mxu0  ;;  %v514_v7 = vpop.f32.mrb[1].mxu1 }
  0xe8   : > { %v400_v8 = vadd.f32 %v399_v6, %v326_v5  ;;  %v519_v9 = vpop.f32.mrb[1].mxu0 }
  0xea   : > { %404 = vst.msk [vmem:[%s251_s6] sm:$0xff] %vm403_vm2, %v400_v8 }
  0xeb PF: > { %s14_s17 = sadd.s32 1, %s569_s17   ;;  %s645_s15 = smov %s565_s16 }
  0xec   : > { %p11_p5 = scmp.ge.s32.totalorder %s14_s17, 4   ;;  %s646_s16 = smov %s648_s18 }
  0xee   :  { %13 = sbr.rel (!%p11_p5) target bundleno = 2 (0x2), region = 69 }

// kernel: rnn_forward.16
= control target key start
LH: loop header
LB: loop body
LE: loop exit
PB: predicated region body
PF: predicated region fallthrough
CT: control target
= control target key end

     0   :  { %s362_s12 = smov 0   ;;  %s404_s0 = inlined_call_operand.vmem [shape: f32[2,16,16], index: 0, kind: input, shape index: {}]   ;;  %s405_s1 = inlined_call_operand.vmem [shape: f32[16,1], index: 1, kind: input, shape index: {}]   ;;  %s406_s2 = inlined_call_operand.vmem [shape: f32[16,1], index: 2, kind: input, shape index: {}]   ;;  %s407_s3 = inlined_call_operand.vmem [shape: f32[2,16,16], index: 3, kind: output, shape index: {}]  }
   0x1 LB: > { %s301_s13 = sadd.s32 4294967295, %s339_s12   ;;  %p305_p0 = scmp.ge.s32.totalorder %s339_s12, 1  ;;  %s339_s12 = sphi %s362_s12, %s13_s12  }
   0x2   : > { %p137_p1 = scmp.lt.s32.totalorder %s339_s12, 3 }
   0x4   : > { %p138_p2 = pnand %p305_p0, %p137_p1 }
   0x5   : > { %p161_p3 = scmp.lt.s32.totalorder (!%p138_p2), %s301_s13, 1  ;;  %vm173_vm0 = vcmask (!%p138_p2), 130048   ;;  %v216_v5 = vld [vmem:[%s405_s1] sm:$0xff] (!%p138_p2)  ;;  %v341_v6 = vmov (!%p138_p2), 0   ;;  %v217_v7 = vld [vmem:[%s405_s1 + $0x8] sm:$0xff] (!%p138_p2) }
   0x6   : > { %141 = sbr.rel (%p138_p2) target bundleno = 512 (0x200), region = 32  ;;  %329 = vset.pattern.permute.xlu1 (!%p138_p2), %v341_v6  ;;  %330 = vset.pattern.permute.xlu0 (!%p138_p2), %v341_v6  ;;  %v231_v8 = vld [vmem:[%s406_s2 + $0x8] sm:$0xff] (!%p138_p2)  ;;  %v230_v24 = vld [vmem:[%s406_s2] sm:$0xff] (!%p138_p2) }
   0x7   : > { %220 = vperm.xlu1 (!%p138_p2), %329, %v216_v5  }
   0xb   : > { %225 = vperm.xlu1 (!%p138_p2), %329, %v217_v7  }
   0xd   : > { %s409_s13 = smov (!%p161_p3, %s301_s13), 1 }
   0xe   : > { %s312_s14 = sshll.u32 %s409_s13, 4 }
   0xf   : > { %s165_s17 = scalar_lea.vmem %s404_s0, %s312_s14  ;;  %239 = vperm.xlu1 %329, %v231_v8   ;;  %s170_s7 = scalar_lea.vmem %s407_s3, %s312_s14 }
  0x10   : > { %v171_v0 = vld [vmem:[%s165_s17] sm:$0xff]  ;;  %v172_v1 = vld [vmem:[%s165_s17 + $0x8] sm:$0xff] }
  0x11   : > { %v174_v2 = vsel %vm173_vm0, %v171_v0, 0.0  ;;  %v175_v3 = vsel %vm173_vm0, %v172_v1, 0.0 }
  0x12   : > { %v176_v4 = vadd.f32 %v175_v3, %v174_v2 }
  0x14   : > { %177 = vadd.xlane.f32.xlu0 %v176_v4 }
  0x86   : > { %v221_v34 = vpop.permute.xlu1 %220 }
  0x8a   : > { %v226_v35 = vpop.permute.xlu1 %225 }
  0x8e   : > { %v240_v42 = vpop.permute.xlu1 %239 }
  0xa1   : > { %v178_v9 = vpop.xlane.xlu0 %177 }
  0xa2   : > { %v179_v10 = vrot.slane %v178_v9, 4 }
  0xa4   : > { %v180_v11 = vadd.f32 %v179_v10, %v178_v9 }
  0xa6   : > { %v181_v12 = vrot.slane %v180_v11, 2 }
  0xa8   : > { %v182_v13 = vadd.f32 %v181_v12, %v180_v11 }
  0xaa   : > { %v183_v14 = vrot.slane %v182_v13, 1 }
  0xac   : > { %v184_v15 = vadd.f32 %v183_v14, %v182_v13 }
  0xae   : > { %314 = vpush %v184_v15 }
  0xdf   : > { %s315_s24 = spop %314 }
  0xe0   : > { %s188_s25 = smul.f32 0.00390625, %s315_s24 }
  0xe2   : > { %v189_v16 = vstv %s188_s25 }
  0xe3   : > { %v190_v17 = vsub.f32 %v171_v0, %v189_v16  ;;  %v191_v18 = vsub.f32 %v172_v1, %v189_v16 }
  0xe5   : > { %v192_v19 = vmul.f32 %v190_v17, %v190_v17  ;;  %v193_v20 = vmul.f32 %v191_v18, %v191_v18 }
  0xe7   : > { %v194_v21 = vsel %vm173_vm0, %v192_v19, 0.0  ;;  %v195_v22 = vsel %vm173_vm0, %v193_v20, 0.0 }
  0xe8   : > { %v196_v23 = vadd.f32 %v195_v22, %v194_v21 }
  0xea   : > { %197 = vadd.xlane.f32.xlu0 %v196_v23 }
 0x100   : > { %234 = vperm.xlu0 %330, %v230_v24  }
 0x177   : > { %v198_v25 = vpop.xlane.xlu0 %197 }
 0x178   : > { %v199_v26 = vrot.slane %v198_v25, 4 }
 0x17a   : > { %v200_v27 = vadd.f32 %v199_v26, %v198_v25 }
 0x17c   : > { %v201_v28 = vrot.slane %v200_v27, 2 }
 0x17e   : > { %v202_v29 = vadd.f32 %v201_v28, %v200_v27 }
 0x17f   : > { %v235_v39 = vpop.permute.xlu0 %234 }
 0x180   : > { %v203_v30 = vrot.slane %v202_v29, 1 }
 0x182   : > { %v204_v31 = vadd.f32 %v203_v30, %v202_v29 }
 0x184   : > { %316 = vpush %v204_v31 }
 0x1b5   : > { %s317_s28 = spop %316 }
 0x1b6   : > { %s208_s29 = smul.f32 0.00390625, %s317_s28 }
 0x1b8   : > { %s209_s30 = sadd.f32 1e-08, %s208_s29 }
 0x1ba   : > { %v210_v32 = vstv %s209_s30 }
 0x1bb   : > { %331 = vrsqrt.f32 %v210_v32 }
 0x1c5   : > { %v332_v33 = vpop.eup %331 }
 0x1c6   : > { %318 = vpush %v332_v33 }
 0x1f7   : > { %s319_s4 = spop %318 }
 0x1f8   : > { %v213_v36 = vstv %s319_s4 }
 0x1f9   : > { %v214_v37 = vmul.f32 %v213_v36, %v190_v17  ;;  %v215_v38 = vmul.f32 %v213_v36, %v191_v18 }
 0x1fb   : > { %v229_v40 = vmul.f32 %v226_v35, %v215_v38  ;;  %v228_v41 = vmul.f32 %v221_v34, %v214_v37 }
 0x1fd   : > { %v243_v43 = vadd.f32 %v240_v42, %v229_v40  ;;  %v242_v44 = vadd.f32 %v235_v39, %v228_v41 }
 0x1ff   : > { %245 = vst.msk [vmem:[%s170_s7 + $0x8] sm:$0xff] %vm173_vm0, %v243_v43  ;;  %244 = vst.msk [vmem:[%s170_s7] sm:$0xff] %vm173_vm0, %v242_v44 }
 0x200 PF: > { %s13_s12 = sadd.s32 1, %s339_s12  }
 0x201   : > { %p10_p4 = scmp.ge.s32.totalorder %s13_s12, 4  }
 0x203   :  { %12 = sbr.rel (!%p10_p4) target bundleno = 1 (0x1), region = 62 }

// kernel: rnn_forward.19
= control target key start
LH: loop header
LB: loop body
LE: loop exit
PB: predicated region body
PF: predicated region fallthrough
CT: control target
= control target key end

     0   :  { %vm34_vm0 = vcmask 64512   ;;  %vm196_vm1 = vcmask 523264   ;;  %s383_s1 = inlined_call_operand.vmem [shape: f32[8,64], index: 1, kind: input, shape index: {}]   ;;  %s384_s0 = inlined_call_operand.vmem [shape: f32[96,8], index: 0, kind: input, shape index: {}]   ;;  %s385_s2 = inlined_call_operand.vmem [shape: f32[1,64], index: 2, kind: input, shape index: {}]   ;;  %s386_s3 = inlined_call_operand.vmem [shape: f32[96,64], index: 3, kind: output, shape index: {}]  }
   0x1   :  { %v26_v0 = vld [vmem:[%s383_s1] sm:$0xff]  ;;  %v20_v2 = vld [vmem:[%s384_s0 + $0x30] sm:$0xff]  ;;  %v15_v3 = vld [vmem:[%s384_s0 + $0x8] sm:$0xff] }
   0x2   :  { %v14_v1 = vld [vmem:[%s384_s0] sm:$0xff]  ;;  %239 = vmatprep.subr.mxu0 %v26_v0  ;;  %259 = vmatprep.subr.mxu1 %v26_v0  ;;  %v21_v4 = vld [vmem:[%s384_s0 + $0x38] sm:$0xff]  ;;  %v16_v5 = vld [vmem:[%s384_s0 + $0x10] sm:$0xff] }
   0x3   :  { %240 = vmatpush3.msra.mxu0 %v26_v0  ;;  %260 = vmatpush3.msra.mxu1 %v26_v0  ;;  %v22_v6 = vld [vmem:[%s384_s0 + $0x40] sm:$0xff]  ;;  %v17_v7 = vld [vmem:[%s384_s0 + $0x18] sm:$0xff]  ;;  %v23_v8 = vld [vmem:[%s384_s0 + $0x48] sm:$0xff] }
   0x4   :  { %241 = vmatprep.mubr.msk.f32.mxu0 %vm34_vm0, %v14_v1  ;;  %250 = vmatprep.mubr.msk.f32.mxu1 %vm34_vm0, %v20_v2  ;;  %v18_v9 = vld [vmem:[%s384_s0 + $0x20] sm:$0xff]  ;;  %v24_v10 = vld [vmem:[%s384_s0 + $0x50] sm:$0xff]  ;;  %v19_v11 = vld [vmem:[%s384_s0 + $0x28] sm:$0xff] }
   0x5   :  { %242 = vmatmul.mubr.msk.f32.vlgmr.msra.gmra.mrb[0].mxu0 %vm34_vm0, %v15_v3  ;;  %251 = vmatmul.mubr.msk.f32.vlgmr.msra.gmra.mrb[0].mxu1 %vm34_vm0, %v21_v4  ;;  %v25_v12 = vld [vmem:[%s384_s0 + $0x58] sm:$0xff]  ;;  %v213_v13 = vld [vmem:[%s385_s2] ss:$0 sm:$0xff] }
   0x6   :  { %244 = vmatprep.mubr.msk.f32.mxu0 %vm34_vm0, %v16_v5  ;;  %253 = vmatprep.mubr.msk.f32.mxu1 %vm34_vm0, %v22_v6 }
   0x9   :  { %245 = vmatmul.mubr.msk.f32.gmra.mrb[2].mxu0 %vm34_vm0, %v17_v7  ;;  %254 = vmatmul.mubr.msk.f32.gmra.mrb[2].mxu1 %vm34_vm0, %v23_v8 }
   0xa   :  { %247 = vmatprep.mubr.msk.f32.mxu0 %vm34_vm0, %v18_v9  ;;  %256 = vmatprep.mubr.msk.f32.mxu1 %vm34_vm0, %v24_v10 }
   0xd   :  { %248 = vmatmul.mubr.msk.f32.gmra.mrb[4].mxu0 %vm34_vm0, %v19_v11  ;;  %257 = vmatmul.mubr.msk.f32.gmra.mrb[4].mxu1 %vm34_vm0, %v25_v12 }
  0xd8   :  { %v243_v14 = vpop.f32.mrb[0].mxu0  ;;  %v252_v15 = vpop.f32.mrb[0].mxu1 }
  0xd9   :  { %v143_v16 = vadd.f32 %v243_v14, %v213_v13  ;;  %v173_v17 = vadd.f32 %v252_v15, %v213_v13  ;;  %v137_v18 = vpop.f32.mrb[1].mxu0  ;;  %v167_v19 = vpop.f32.mrb[1].mxu1 }
  0xda   :  { %v138_v20 = vadd.f32 %v213_v13, %v137_v18  ;;  %v168_v21 = vadd.f32 %v213_v13, %v167_v19 }
  0xdb   :  { %198 = vst.msk [vmem:[%s386_s3 + $0x8] sm:$0xff] %vm196_vm1, %v143_v16  ;;  %204 = vst.msk [vmem:[%s386_s3 + $0x38] sm:$0xff] %vm196_vm1, %v173_v17 }
  0xdc   :  { %197 = vst.msk [vmem:[%s386_s3] sm:$0xff] %vm196_vm1, %v138_v20  ;;  %203 = vst.msk [vmem:[%s386_s3 + $0x30] sm:$0xff] %vm196_vm1, %v168_v21  ;;  %v246_v22 = vpop.f32.mrb[2].mxu0  ;;  %v255_v23 = vpop.f32.mrb[2].mxu1 }
  0xdd   :  { %v153_v24 = vadd.f32 %v246_v22, %v213_v13  ;;  %v183_v25 = vadd.f32 %v255_v23, %v213_v13  ;;  %v147_v26 = vpop.f32.mrb[3].mxu0  ;;  %v177_v27 = vpop.f32.mrb[3].mxu1 }
  0xde   :  { %v148_v28 = vadd.f32 %v213_v13, %v147_v26  ;;  %v178_v29 = vadd.f32 %v213_v13, %v177_v27 }
  0xdf   :  { %200 = vst.msk [vmem:[%s386_s3 + $0x18] sm:$0xff] %vm196_vm1, %v153_v24  ;;  %206 = vst.msk [vmem:[%s386_s3 + $0x48] sm:$0xff] %vm196_vm1, %v183_v25 }
  0xe0   :  { %199 = vst.msk [vmem:[%s386_s3 + $0x10] sm:$0xff] %vm196_vm1, %v148_v28  ;;  %205 = vst.msk [vmem:[%s386_s3 + $0x40] sm:$0xff] %vm196_vm1, %v178_v29  ;;  %v249_v30 = vpop.f32.mrb[4].mxu0  ;;  %v258_v31 = vpop.f32.mrb[4].mxu1 }
  0xe1   :  { %v163_v32 = vadd.f32 %v249_v30, %v213_v13  ;;  %v193_v33 = vadd.f32 %v258_v31, %v213_v13  ;;  %v157_v34 = vpop.f32.mrb[5].mxu0  ;;  %v187_v35 = vpop.f32.mrb[5].mxu1 }
  0xe2   :  { %v158_v36 = vadd.f32 %v213_v13, %v157_v34  ;;  %v188_v37 = vadd.f32 %v213_v13, %v187_v35 }
  0xe3   :  { %202 = vst.msk [vmem:[%s386_s3 + $0x28] sm:$0xff] %vm196_vm1, %v163_v32  ;;  %208 = vst.msk [vmem:[%s386_s3 + $0x58] sm:$0xff] %vm196_vm1, %v193_v33 }
  0xe4   :  { %201 = vst.msk [vmem:[%s386_s3 + $0x20] sm:$0xff] %vm196_vm1, %v158_v36  ;;  %207 = vst.msk [vmem:[%s386_s3 + $0x50] sm:$0xff] %vm196_vm1, %v188_v37 }

// kernel: rnn_forward.21
= control target key start
LH: loop header
LB: loop body
LE: loop exit
PB: predicated region body
PF: predicated region fallthrough
CT: control target
= control target key end

     0   :  { %s392_s15 = smov 0   ;;  %s426_s0 = inlined_call_operand.vmem [shape: f32[2,8,48], index: 0, kind: input, shape index: {}]   ;;  %s427_s1 = inlined_call_operand.vmem [shape: f32[2,8,48], index: 1, kind: input, shape index: {}]   ;;  %s428_s2 = inlined_call_operand.vmem [shape: f32[8,1], index: 2, kind: input, shape index: {}]   ;;  %s429_s3 = inlined_call_operand.vmem [shape: f32[8,1], index: 3, kind: input, shape index: {}]   ;;  %s430_s4 = inlined_call_operand.vmem [shape: f32[2,8,48], index: 4, kind: output, shape index: {}]  }
   0x1 LB: > { %s329_s16 = sadd.s32 4294967295, %s364_s15   ;;  %p333_p0 = scmp.ge.s32.totalorder %s364_s15, 1  ;;  %s364_s15 = sphi %s392_s15, %s14_s15  }
   0x2   : > { %p170_p1 = scmp.lt.s32.totalorder %s364_s15, 3 }
   0x4   : > { %p171_p2 = pnand %p333_p0, %p170_p1 }
   0x5   : > { %p198_p3 = scmp.lt.s32.totalorder (!%p171_p2), %s329_s16, 1  ;;  %vm211_vm0 = vcmask (!%p171_p2), 392192   ;;  %v247_v2 = vld [vmem:[%s428_s2] sm:$0xff] (!%p171_p2)  ;;  %v366_v3 = vmov (!%p171_p2), 0  }
   0x6   : > { %174 = sbr.rel (%p171_p2) target bundleno = 510 (0x1fe), region = 36  ;;  %354 = vset.pattern.permute.xlu1 (!%p171_p2), %v366_v3  ;;  %355 = vset.pattern.permute.xlu0 (!%p171_p2), %v366_v3  ;;  %v254_v15 = vld [vmem:[%s429_s3] sm:$0xff] (!%p171_p2) }
   0x7   : > { %250 = vperm.xlu1 (!%p171_p2), %354, %v247_v2  }
   0xb   : > { %257 = vperm.xlu1 (!%p171_p2), %354, %v254_v15  }
   0xd   : > { %s432_s16 = smov (!%p198_p3, %s329_s16), 1 }
   0xe   : > { %s400_s17 = sshll.u32 %s432_s16, 3 }
   0xf   : > { %s201_s20 = scalar_lea.vmem %s426_s0, %s400_s17  ;;  %s205_s7 = scalar_lea.vmem %s427_s1, %s400_s17 }
  0x10   : > { %v210_v0 = vld [vmem:[%s201_s20] sm:$0xff]  ;;  %s209_s10 = scalar_lea.vmem %s430_s4, %s400_s17 }
  0x11   : > { %v212_v1 = vsel %vm211_vm0, %v210_v0, 0.0  ;;  %v261_v30 = vld [vmem:[%s205_s7] sm:$0xff] }
  0x12   : > { %213 = vadd.xlane.f32.xlu0 %v212_v1 }
  0x86   : > { %v251_v25 = vpop.permute.xlu1 %250 }
  0x8a   : > { %v258_v29 = vpop.permute.xlu1 %257 }
  0x9f   : > { %v214_v4 = vpop.xlane.xlu0 %213 }
  0xa0   : > { %v215_v5 = vrot.slane %v214_v4, 4 }
  0xa2   : > { %v216_v6 = vadd.f32 %v215_v5, %v214_v4 }
  0xa4   : > { %v217_v7 = vrot.slane %v216_v6, 2 }
  0xa6   : > { %v218_v8 = vadd.f32 %v217_v7, %v216_v6 }
  0xa8   : > { %v219_v9 = vrot.slane %v218_v8, 1 }
  0xaa   : > { %v220_v10 = vadd.f32 %v219_v9, %v218_v8 }
  0xac   : > { %339 = vpush %v220_v10 }
  0xdd   : > { %s340_s23 = spop %339 }
  0xde   : > { %s224_s24 = smul.f32 0.0026041667, %s340_s23 }
  0xe0   : > { %v225_v11 = vstv %s224_s24 }
  0xe1   : > { %v226_v12 = vsub.f32 %v210_v0, %v225_v11 }
  0xe3   : > { %v227_v13 = vmul.f32 %v226_v12, %v226_v12 }
  0xe5   : > { %v228_v14 = vsel %vm211_vm0, %v227_v13, 0.0 }
  0xe6   : > { %229 = vadd.xlane.f32.xlu0 %v228_v14 }
 0x173   : > { %v230_v16 = vpop.xlane.xlu0 %229 }
 0x174   : > { %v231_v17 = vrot.slane %v230_v16, 4 }
 0x176   : > { %v232_v18 = vadd.f32 %v231_v17, %v230_v16 }
 0x178   : > { %v233_v19 = vrot.slane %v232_v18, 2 }
 0x17a   : > { %v234_v20 = vadd.f32 %v233_v19, %v232_v18 }
 0x17c   : > { %v235_v21 = vrot.slane %v234_v20, 1 }
 0x17e   : > { %v236_v22 = vadd.f32 %v235_v21, %v234_v20 }
 0x180   : > { %341 = vpush %v236_v22 }
 0x1b1   : > { %s342_s27 = spop %341 }
 0x1b2   : > { %s240_s28 = smul.f32 0.0026041667, %s342_s27 }
 0x1b4   : > { %s241_s29 = sadd.f32 1e-08, %s240_s28 }
 0x1b6   : > { %v242_v23 = vstv %s241_s29 }
 0x1b7   : > { %356 = vrsqrt.f32 %v242_v23 }
 0x1c1   : > { %v357_v24 = vpop.eup %356 }
 0x1c2   : > { %343 = vpush %v357_v24 }
 0x1f3   : > { %s344_s30 = spop %343 }
 0x1f4   : > { %v245_v26 = vstv %s344_s30 }
 0x1f5   : > { %v246_v27 = vmul.f32 %v245_v26, %v226_v12 }
 0x1f7   : > { %v253_v28 = vmul.f32 %v251_v25, %v246_v27 }
 0x1f9   : > { %v260_v31 = vadd.f32 %v258_v29, %v253_v28 }
 0x1fb   : > { %v262_v32 = vadd.f32 %v261_v30, %v260_v31 }
 0x1fd   : > { %263 = vst.msk [vmem:[%s209_s10] sm:$0xff] %vm211_vm0, %v262_v32 }
 0x1fe PF: > { %s14_s15 = sadd.s32 1, %s364_s15  }
 0x1ff   : > { %p11_p4 = scmp.ge.s32.totalorder %s14_s15, 4  }
 0x201   :  { %13 = sbr.rel (!%p11_p4) target bundleno = 1 (0x1), region = 69 }

// kernel: rnn_forward.20
= control target key start
LH: loop header
LB: loop body
LE: loop exit
PB: predicated region body
PF: predicated region fallthrough
CT: control target
= control target key end

     0   :  { %s644_s15 = smov 0   ;;  %s690_s0 = inlined_call_operand.vmem [shape: f32[8,12,64], index: 0, kind: input, shape index: {}]   ;;  %s691_s1 = inlined_call_operand.vmem [shape: f32[16,64], index: 1, kind: input, shape index: {}]   ;;  %s692_s2 = inlined_call_operand.vmem [shape: f32[16,8], index: 2, kind: input, shape index: {}]   ;;  %s693_s3 = inlined_call_operand.vmem [shape: f32[1,8], index: 3, kind: input, shape index: {}]   ;;  %s694_s4 = inlined_call_operand.vmem [shape: f32[8,12,8], index: 4, kind: output, shape index: {}]  }
   0x1 LB: > { %s524_s16 = sadd.s32 4294967295, %s611_s15   ;;  %p528_p0 = scmp.ge.s32.totalorder %s611_s15, 1  ;;  %s611_s15 = sphi %s644_s15, %s14_s15  }
   0x2   : > { %p162_p1 = scmp.lt.s32.totalorder %s611_s15, 9 }
   0x4   : > { %p163_p2 = pnand %p528_p0, %p162_p1 }
   0x5   : > { %p188_p3 = scmp.lt.s32.totalorder (!%p163_p2), %s524_s16, 7  ;;  %p533_p4 = scmp.ne.s32.totalorder (!%p163_p2), %s524_s16, 0 }
   0x6   : > { %166 = sbr.rel (%p163_p2) target bundleno = 951 (0x3b7), region = 36 }
   0xd   : > { %s189_s17 = scalar_select %p188_p3, %s524_s16, 7 }
   0xe   : > { %201 = sbr.rel (%p533_p4) target bundleno = 21 (0x15), region = 40  ;;  %vm202_vm0 = vcmask (!%p533_p4), 130048   ;;  %vm204_vm1 = vcmask (!%p533_p4), 125952   ;;  %v613_v0 = vmov (!%p533_p4), 0.0  }
   0xf   : > { %s543_s18 = sshll.u32 %s189_s17, 4  ;;  %203 = vst.msk [vmem:[#allocation2] sm:$0xff] (!%p533_p4), %vm202_vm0, %v613_v0  ;;  %206 = vst.msk [vmem:[#allocation3] sm:$0xff] (!%p533_p4), %vm202_vm0, %v613_v0 }
  0x10   : > { %s192_s21 = scalar_lea.vmem %s690_s0, %s543_s18  ;;  %s658_s24 = scalar_lea.vmem %s694_s4, %s543_s18  ;;  %205 = vst.msk [vmem:[#allocation2 + $0x8] sm:$0xf] (!%p533_p4), %vm204_vm1, %v613_v0  ;;  %207 = vst.msk [vmem:[#allocation3 + $0x8] sm:$0xf] (!%p533_p4), %vm204_vm1, %v613_v0 }
  0x15 PF: > { %v212_v1 = vld [vmem:[%s691_s1] sm:$0xff]  ;;  %v213_v2 = vld [vmem:[%s691_s1 + $0x8] sm:$0xff]  ;;  %vm214_vm2 = vcmask 130048   ;;  %s614_s29 = smov 16   ;;  %s615_s30 = smov 96   ;;  %vm365_vm3 = vcmask 125952  }
  0x16   : > { %v210_v3 = vld [vmem:[#allocation2] sm:$0xff]  ;;  %v567_v4 = vpack.c.bf16 %v213_v2, %v212_v1  ;;  %v312_v5 = vld [vmem:[#allocation3] sm:$0xff]  ;;  %v209_v10 = vld [vmem:[%s192_s21 + $0x8] sm:$0xf]  ;;  %s616_s5 = smov 32   ;;  %s617_s10 = smov 80  }
  0x17   : > { %557 = vmatprep.mubr.msk.f32.mxu0 %vm214_vm2, %v210_v3  ;;  %316 = vrot.lane.b32.xlu1 %v312_v5, %s614_s29  ;;  %v313_v6 = vld [vmem:[#allocation3 + $0x8] sm:$0xf]  ;;  %v211_v7 = vld [vmem:[#allocation2 + $0x8] sm:$0xf]  ;;  %v208_v8 = vld [vmem:[%s192_s21] sm:$0xff]  ;;  %s618_s11 = smov 112  }
  0x18   : > { %568 = vmatprep.subr.bf16.mxu0 %v567_v4  ;;  %v377_v38 = vld [vmem:[%s692_s2] sm:$0xff]  ;;  %v378_v39 = vld [vmem:[%s692_s2 + $0x8] sm:$0xff]  ;;  %vm467_vm4 = vcmask 60416   ;;  %vm465_vm5 = vcmask 64512  }
  0x19   : > { %570 = vmatpush3.bf16.msra.mxu0 %v567_v4  ;;  %v571_v40 = vpack.c.bf16 %v378_v39, %v377_v38  ;;  %v538_v49 = vld [vmem:[%s693_s3] ss:$0 sm:$0xff] }
  0x1b   : > { %318 = vrot.lane.b32.xlu1 %v313_v6, %s614_s29  ;;  %572 = vmatprep.subr.bf16.mxu1 %v571_v40 }
  0x1c   : > { %558 = vmatmul.mubr.msk.f32.vlgmr.msra.gmra.mrb[0].mxu0 %vm214_vm2, %v211_v7  ;;  %574 = vmatpush3.bf16.msra.mxu1 %v571_v40 }
  0x89   : > { %v317_v28 = vpop.permute.xlu1 %316 }
  0x8d   : > { %v319_v30 = vpop.permute.xlu1 %318 }
  0xef   : > { %v559_v9 = vpop.f32.mrb[0].mxu0 }
  0xf0   : > { %v287_v11 = vpop.f32.mrb[1].mxu0  ;;  %v297_v13 = vadd.f32 %v559_v9, %v209_v10 }
  0xf1   : > { %v296_v12 = vadd.f32 %v287_v11, %v208_v8 }
  0xf2   : > { %v537_v17 = vmul.f32 -1.442695, %v297_v13 }
  0xf3   : > { %589 = vtanh.f32 %v296_v12  ;;  %v536_v16 = vmul.f32 -1.442695, %v296_v12 }
  0xf4   : > { %591 = vtanh.f32 %v297_v13 }
  0xf5   : > { %593 = vpow2.f32 %v536_v16 }
  0xf6   : > { %595 = vpow2.f32 %v537_v17 }
  0xfd   : > { %v590_v14 = vpop.eup %589 }
  0xfe   : > { %326 = vrot.lane.b32.xlu0 %v590_v14, %s615_s30  ;;  %v592_v15 = vpop.eup %591 }
  0xff   : > { %v594_v18 = vpop.eup %593 }
 0x100   : > { %v304_v19 = vadd.f32 1.0, %v594_v18  ;;  %v596_v20 = vpop.eup %595 }
 0x101   : > { %v305_v21 = vadd.f32 1.0, %v596_v20 }
 0x102   : > { %328 = vrot.lane.b32.xlu0 %v592_v15, %s615_s30  ;;  %597 = vrcp.f32 %v304_v19 }
 0x103   : > { %599 = vrcp.f32 %v305_v21 }
 0x10c   : > { %v598_v22 = vpop.eup %597 }
 0x10d   : > { %v600_v25 = vpop.eup %599  ;;  %v322_v29 = vmul.f32 %v598_v22, %v317_v28 }
 0x10e   : > { %v323_v33 = vmul.f32 %v600_v25, %v319_v30 }
 0x170   : > { %v327_v23 = vpop.permute.xlu0 %326 }
 0x171   : > { %v332_v24 = vmul.f32 %v598_v22, %v327_v23 }
 0x173   : > { %336 = vrot.lane.b32.xlu0 %v332_v24, %s614_s29 }
 0x174   : > { %v329_v26 = vpop.permute.xlu0 %328 }
 0x175   : > { %v333_v27 = vmul.f32 %v600_v25, %v329_v26 }
 0x177   : > { %338 = vrot.lane.b32.xlu1 %v333_v27, %s614_s29 }
 0x1e5   : > { %v337_v31 = vpop.permute.xlu0 %336 }
 0x1e6   : > { %v342_v32 = vadd.f32 %v337_v31, %v322_v29 }
 0x1e8   : > { %601 = vtanh.f32 %v342_v32 }
 0x1e9   : > { %v339_v34 = vpop.permute.xlu1 %338 }
 0x1ea   : > { %v343_v35 = vadd.f32 %v339_v34, %v323_v33 }
 0x1ec   : > { %603 = vtanh.f32 %v343_v35 }
 0x1f2   : > { %v602_v36 = vpop.eup %601 }
 0x1f3   : > { %348 = vrot.lane.b32.xlu0 %v602_v36, %s616_s5 }
 0x1f6   : > { %v604_v37 = vpop.eup %603 }
 0x1f7   : > { %350 = vrot.lane.b32.xlu1 %v604_v37, %s616_s5 }
 0x265   : > { %v349_v41 = vpop.permute.xlu0 %348 }
 0x266   : > { %v354_v42 = vmul.f32 %v598_v22, %v349_v41 }
 0x268   : > { %369 = vrot.lane.b32.xlu0 %v354_v42, %s617_s10 }
 0x269   : > { %v351_v43 = vpop.permute.xlu1 %350 }
 0x26a   : > { %v355_v44 = vmul.f32 %v600_v25, %v351_v43 }
 0x26c   : > { %371 = vrot.lane.b32.xlu1 %v355_v44, %s617_s10  ;;  %358 = vrot.lane.b32.xlu0 %v342_v32, %s618_s11 }
 0x270   : > { %360 = vrot.lane.b32.xlu1 %v343_v35, %s618_s11 }
 0x2da   : > { %v370_v45 = vpop.permute.xlu0 %369 }
 0x2db   : > { %375 = vst.msk [vmem:[#allocation2] sm:$0xff] %vm214_vm2, %v370_v45  ;;  %564 = vmatprep.mubr.msk.f32.mxu1 %vm214_vm2, %v370_v45 }
 0x2de   : > { %v372_v46 = vpop.permute.xlu1 %371  ;;  %v359_v47 = vpop.permute.xlu0 %358 }
 0x2df   : > { %376 = vst.msk [vmem:[#allocation2 + $0x8] sm:$0xf] %vm365_vm3, %v372_v46  ;;  %565 = vmatmul.mubr.msk.f32.vlgmr.msra.gmra.mrb[0].mxu1 %vm214_vm2, %v372_v46 }
 0x2e0   : > { %364 = vst.msk [vmem:[#allocation3] sm:$0xff] %vm214_vm2, %v359_v47 }
 0x2e2   : > { %v361_v48 = vpop.permute.xlu1 %360 }
 0x2e3   : > { %366 = vst.msk [vmem:[#allocation3 + $0x8] sm:$0xf] %vm365_vm3, %v361_v48 }
 0x3b2   : > { %v566_v50 = vpop.f32.mrb[0].mxu1 }
 0x3b3   : > { %v462_v51 = vadd.f32 %v566_v50, %v538_v49  ;;  %v456_v52 = vpop.f32.mrb[1].mxu1 }
 0x3b4   : > { %v457_v53 = vadd.f32 %v538_v49, %v456_v52 }
 0x3b5   : > { %468 = vst.msk [vmem:[%s658_s24 + $0x8] sm:$0xf] %vm467_vm4, %v462_v51 }
 0x3b6   : > { %466 = vst.msk [vmem:[%s658_s24] sm:$0xff] %vm465_vm5, %v457_v53 }
 0x3b7 PF: > { %s14_s15 = sadd.s32 1, %s611_s15  }
 0x3b8   : > { %p11_p5 = scmp.ge.s32.totalorder %s14_s15, 10  }
 0x3ba   :  { %13 = sbr.rel (!%p11_p5) target bundleno = 1 (0x1), region = 70 }

// kernel: rnn_forward.23
= control target key start
LH: loop header
LB: loop body
LE: loop exit
PB: predicated region body
PF: predicated region fallthrough
CT: control target
= control target key end

     0   :  { %s641_s15 = smov 0   ;;  %s689_s0 = inlined_call_operand.vmem [shape: f32[6,16,64], index: 0, kind: input, shape index: {}]   ;;  %s690_s1 = inlined_call_operand.vmem [shape: f32[16,64], index: 1, kind: input, shape index: {}]   ;;  %s691_s2 = inlined_call_operand.vmem [shape: f32[16,8], index: 2, kind: input, shape index: {}]   ;;  %s692_s3 = inlined_call_operand.vmem [shape: f32[1,8], index: 3, kind: input, shape index: {}]   ;;  %s693_s4 = inlined_call_operand.vmem [shape: f32[6,16,8], index: 4, kind: output, shape index: {}]  }
   0x1 LB: > { %s521_s16 = sadd.s32 4294967295, %s608_s15   ;;  %p525_p0 = scmp.ge.s32.totalorder %s608_s15, 1  ;;  %s608_s15 = sphi %s641_s15, %s14_s15  }
   0x2   : > { %p162_p1 = scmp.lt.s32.totalorder %s608_s15, 7 }
   0x4   : > { %p163_p2 = pnand %p525_p0, %p162_p1 }
   0x5   : > { %p188_p3 = scmp.lt.s32.totalorder (!%p163_p2), %s521_s16, 5  ;;  %p530_p4 = scmp.ne.s32.totalorder (!%p163_p2), %s521_s16, 0 }
   0x6   : > { %166 = sbr.rel (%p163_p2) target bundleno = 951 (0x3b7), region = 36 }
   0xd   : > { %s189_s17 = scalar_select %p188_p3, %s521_s16, 5 }
   0xe   : > { %201 = sbr.rel (%p530_p4) target bundleno = 21 (0x15), region = 40  ;;  %vm202_vm0 = vcmask (!%p530_p4), 130048   ;;  %v610_v0 = vmov (!%p530_p4), 0.0  }
   0xf   : > { %s540_s18 = sshll.u32 %s189_s17, 4  ;;  %203 = vst.msk [vmem:[#allocation2] sm:$0xff] (!%p530_p4), %vm202_vm0, %v610_v0  ;;  %204 = vst.msk [vmem:[#allocation2 + $0x8] sm:$0xff] (!%p530_p4), %vm202_vm0, %v610_v0 }
  0x10   : > { %s192_s21 = scalar_lea.vmem %s689_s0, %s540_s18  ;;  %s655_s24 = scalar_lea.vmem %s693_s4, %s540_s18  ;;  %205 = vst.msk [vmem:[#allocation3] sm:$0xff] (!%p530_p4), %vm202_vm0, %v610_v0  ;;  %206 = vst.msk [vmem:[#allocation3 + $0x8] sm:$0xff] (!%p530_p4), %vm202_vm0, %v610_v0 }
  0x15 PF: > { %v211_v1 = vld [vmem:[%s690_s1] sm:$0xff]  ;;  %v212_v2 = vld [vmem:[%s690_s1 + $0x8] sm:$0xff]  ;;  %vm213_vm1 = vcmask 130048   ;;  %s611_s29 = smov 16   ;;  %s612_s30 = smov 96   ;;  %vm463_vm2 = vcmask 64512  }
  0x16   : > { %v209_v3 = vld [vmem:[#allocation2] sm:$0xff]  ;;  %v564_v4 = vpack.c.bf16 %v212_v2, %v211_v1  ;;  %v210_v7 = vld [vmem:[#allocation2 + $0x8] sm:$0xff]  ;;  %s613_s5 = smov 32   ;;  %s614_s10 = smov 80  }
  0x17   : > { %554 = vmatprep.mubr.msk.f32.mxu0 %vm213_vm1, %v209_v3  ;;  %v311_v5 = vld [vmem:[#allocation3] sm:$0xff]  ;;  %v312_v6 = vld [vmem:[#allocation3 + $0x8] sm:$0xff]  ;;  %v207_v8 = vld [vmem:[%s192_s21] sm:$0xff]  ;;  %s615_s11 = smov 112  }
  0x18   : > { %315 = vrot.lane.b32.xlu1 %v311_v5, %s611_s29  ;;  %565 = vmatprep.subr.bf16.mxu0 %v564_v4  ;;  %v208_v10 = vld [vmem:[%s192_s21 + $0x8] sm:$0xff]  ;;  %v375_v38 = vld [vmem:[%s691_s2] sm:$0xff] }
  0x19   : > { %567 = vmatpush3.bf16.msra.mxu0 %v564_v4  ;;  %v376_v39 = vld [vmem:[%s691_s2 + $0x8] sm:$0xff]  ;;  %v535_v49 = vld [vmem:[%s692_s3] ss:$0 sm:$0xff] }
  0x1a   : > { %v568_v40 = vpack.c.bf16 %v376_v39, %v375_v38 }
  0x1c   : > { %317 = vrot.lane.b32.xlu1 %v312_v6, %s611_s29  ;;  %555 = vmatmul.mubr.msk.f32.vlgmr.msra.gmra.mrb[0].mxu0 %vm213_vm1, %v210_v7 }
  0x1d   : > { %569 = vmatprep.subr.bf16.mxu1 %v568_v40 }
  0x1e   : > { %571 = vmatpush3.bf16.msra.mxu1 %v568_v40 }
  0x8a   : > { %v316_v28 = vpop.permute.xlu1 %315 }
  0x8e   : > { %v318_v30 = vpop.permute.xlu1 %317 }
  0xef   : > { %v556_v9 = vpop.f32.mrb[0].mxu0 }
  0xf0   : > { %v286_v11 = vpop.f32.mrb[1].mxu0  ;;  %v296_v13 = vadd.f32 %v556_v9, %v208_v10 }
  0xf1   : > { %v295_v12 = vadd.f32 %v286_v11, %v207_v8 }
  0xf2   : > { %v534_v17 = vmul.f32 -1.442695, %v296_v13 }
  0xf3   : > { %586 = vtanh.f32 %v295_v12  ;;  %v533_v16 = vmul.f32 -1.442695, %v295_v12 }
  0xf4   : > { %588 = vtanh.f32 %v296_v13 }
  0xf5   : > { %590 = vpow2.f32 %v533_v16 }
  0xf6   : > { %592 = vpow2.f32 %v534_v17 }
  0xfd   : > { %v587_v14 = vpop.eup %586 }
  0xfe   : > { %325 = vrot.lane.b32.xlu0 %v587_v14, %s612_s30  ;;  %v589_v15 = vpop.eup %588 }
  0xff   : > { %v591_v18 = vpop.eup %590 }
 0x100   : > { %v303_v19 = vadd.f32 1.0, %v591_v18  ;;  %v593_v20 = vpop.eup %592 }
 0x101   : > { %v304_v21 = vadd.f32 1.0, %v593_v20 }
 0x102   : > { %327 = vrot.lane.b32.xlu0 %v589_v15, %s612_s30  ;;  %594 = vrcp.f32 %v303_v19 }
 0x103   : > { %596 = vrcp.f32 %v304_v21 }
 0x10c   : > { %v595_v22 = vpop.eup %594 }
 0x10d   : > { %v597_v25 = vpop.eup %596  ;;  %v321_v29 = vmul.f32 %v595_v22, %v316_v28 }
 0x10e   : > { %v322_v33 = vmul.f32 %v597_v25, %v318_v30 }
 0x170   : > { %v326_v23 = vpop.permute.xlu0 %325 }
 0x171   : > { %v331_v24 = vmul.f32 %v595_v22, %v326_v23 }
 0x173   : > { %335 = vrot.lane.b32.xlu0 %v331_v24, %s611_s29 }
 0x174   : > { %v328_v26 = vpop.permute.xlu0 %327 }
 0x175   : > { %v332_v27 = vmul.f32 %v597_v25, %v328_v26 }
 0x177   : > { %337 = vrot.lane.b32.xlu1 %v332_v27, %s611_s29 }
 0x1e5   : > { %v336_v31 = vpop.permute.xlu0 %335 }
 0x1e6   : > { %v341_v32 = vadd.f32 %v336_v31, %v321_v29 }
 0x1e8   : > { %598 = vtanh.f32 %v341_v32 }
 0x1e9   : > { %v338_v34 = vpop.permute.xlu1 %337 }
 0x1ea   : > { %v342_v35 = vadd.f32 %v338_v34, %v322_v33 }
 0x1ec   : > { %600 = vtanh.f32 %v342_v35 }
 0x1f2   : > { %v599_v36 = vpop.eup %598 }
 0x1f3   : > { %347 = vrot.lane.b32.xlu0 %v599_v36, %s613_s5 }
 0x1f6   : > { %v601_v37 = vpop.eup %600 }
 0x1f7   : > { %349 = vrot.lane.b32.xlu1 %v601_v37, %s613_s5 }
 0x265   : > { %v348_v41 = vpop.permute.xlu0 %347 }
 0x266   : > { %v353_v42 = vmul.f32 %v595_v22, %v348_v41 }
 0x268   : > { %367 = vrot.lane.b32.xlu0 %v353_v42, %s614_s10 }
 0x269   : > { %v350_v43 = vpop.permute.xlu1 %349 }
 0x26a   : > { %v354_v44 = vmul.f32 %v597_v25, %v350_v43 }
 0x26c   : > { %369 = vrot.lane.b32.xlu1 %v354_v44, %s614_s10  ;;  %357 = vrot.lane.b32.xlu0 %v341_v32, %s615_s11 }
 0x270   : > { %359 = vrot.lane.b32.xlu1 %v342_v35, %s615_s11 }
 0x2da   : > { %v368_v45 = vpop.permute.xlu0 %367 }
 0x2db   : > { %373 = vst.msk [vmem:[#allocation2] sm:$0xff] %vm213_vm1, %v368_v45  ;;  %561 = vmatprep.mubr.msk.f32.mxu1 %vm213_vm1, %v368_v45 }
 0x2de   : > { %v370_v46 = vpop.permute.xlu1 %369  ;;  %v358_v47 = vpop.permute.xlu0 %357 }
 0x2df   : > { %374 = vst.msk [vmem:[#allocation2 + $0x8] sm:$0xff] %vm213_vm1, %v370_v46  ;;  %363 = vst.msk [vmem:[#allocation3] sm:$0xff] %vm213_vm1, %v358_v47  ;;  %562 = vmatmul.mubr.msk.f32.vlgmr.msra.gmra.mrb[0].mxu1 %vm213_vm1, %v370_v46 }
 0x2e2   : > { %v360_v48 = vpop.permute.xlu1 %359 }
 0x2e3   : > { %364 = vst.msk [vmem:[#allocation3 + $0x8] sm:$0xff] %vm213_vm1, %v360_v48 }
 0x3b2   : > { %v563_v50 = vpop.f32.mrb[0].mxu1 }
 0x3b3   : > { %v460_v51 = vadd.f32 %v563_v50, %v535_v49  ;;  %v454_v52 = vpop.f32.mrb[1].mxu1 }
 0x3b4   : > { %v455_v53 = vadd.f32 %v535_v49, %v454_v52 }
 0x3b5   : > { %465 = vst.msk [vmem:[%s655_s24 + $0x8] sm:$0xff] %vm463_vm2, %v460_v51 }
 0x3b6   : > { %464 = vst.msk [vmem:[%s655_s24] sm:$0xff] %vm463_vm2, %v455_v53 }
 0x3b7 PF: > { %s14_s15 = sadd.s32 1, %s608_s15  }
 0x3b8   : > { %p11_p5 = scmp.ge.s32.totalorder %s14_s15, 8  }
 0x3ba   :  { %13 = sbr.rel (!%p11_p5) target bundleno = 1 (0x1), region = 70 }

// kernel: rnn_forward.31
= control target key start
LH: loop header
LB: loop body
LE: loop exit
PB: predicated region body
PF: predicated region fallthrough
CT: control target
= control target key end

     0   :  { %s684_s0 = inlined_call_operand.<no memory space> [shape: f32[1,1], index: 0, kind: input, shape index: {}]   ;;  %s685_s1 = inlined_call_operand.vmem [shape: f32[16,8], index: 1, kind: input, shape index: {}]   ;;  %s686_s2 = inlined_call_operand.vmem [shape: f32[2,8,16], index: 2, kind: input, shape index: {}]   ;;  %s687_s3 = inlined_call_operand.hbm [shape: f32[2,16,16], index: 3, kind: output, shape index: {}]  }
   0x1   :  { %8 = sst [smem:[#allocation2]] %s684_s0 }
   0x2   :  { %9 = vsyncpa [#allocation4], 0 }
   0x3   :  { %11 = vsyncpa [#allocation4 + $0x1], 0  ;;  %s563_s14 = smov 0   ;;  %s565_s15 = smov 0  }
   0x4   :  { %s567_s16 = smov 0   ;;  %s569_s17 = smov 0  }
   0x5   :  { %s571_s18 = smov 0   ;;  %s573_s19 = smov 0  }
   0x6 LB: > { %s377_s0 = sadd.s32 4294967295, %s535_s19   ;;  %s378_s20 = sadd.s32 4294967294, %s535_s19   ;;  %s535_s19 = sphi %s573_s19, %s17_s19   ;;  %s531_s18 = sphi %s571_s18, %s694_s18   ;;  %s527_s17 = sphi %s569_s17, %s693_s17   ;;  %s523_s16 = sphi %s567_s16, %s692_s16   ;;  %s519_s15 = sphi %s565_s15, %s691_s15   ;;  %s515_s14 = sphi %s563_s14, %s690_s14  }
   0x7   : > { %s29_s21 = sadd.s32 1, %s531_s18  ;;  %s108_s22 = sadd.s32 1, %s523_s16 }
   0x8   : > { %p31_p0 = scmp.ge.s32.totalorder %s29_s21, 2  ;;  %p118_p1 = scmp.ne.s32.totalorder %s523_s16, %s519_s15 }
   0x9   : > { %p119_p2 = scmp.eq.s32.totalorder %s377_s0, 1  ;;  %p124_p3 = scmp.ne.s32.totalorder %s519_s15, %s515_s14 }
   0xa   : > { %s696_s21 = smov (%p31_p0, %s29_s21), 0  ;;  %p125_p5 = scmp.eq.s32.totalorder %s378_s20, 1 }
   0xb   : > { %p603_p4 = por %p119_p2, %p118_p1  ;;  %s103_s24 = ssub.s32 %s531_s18, %s696_s21 }
   0xc   : > { %p381_p6 = scmp.ge.s32.totalorder %s535_s19, 1  ;;  %p106_p7 = scmp.eq.s32.totalorder %s103_s24, 0 }
   0xd   : > { %p610_p8 = por %p125_p5, %p124_p3  ;;  %p159_p9 = scmp.lt.s32.totalorder %s535_s19, 3 }
   0xe   : > { %s616_s26 = scalar_select %p106_p7, %s523_s16, %s108_s22  }
   0xf   : > { %p160_p10 = pnand %p381_p6, %p159_p9 }
  0x10   : > { %p185_p11 = scmp.lt.s32.totalorder (!%p160_p10), %s527_s17, 1  ;;  %s192_s27 = sld [smem:[#allocation2]] (!%p160_p10)  ;;  %v198_v0 = vld [vmem:[%s685_s1] sm:$0xff] (!%p160_p10)  ;;  %vm200_vm0 = vcmask (!%p160_p10), 64512   ;;  %v199_v5 = vld [vmem:[%s685_s1 + $0x8] sm:$0xff] (!%p160_p10)  ;;  %vm284_vm2 = vcmask (!%p160_p10), 130048  }
  0x11   : > { %163 = sbr.rel (%p160_p10) target bundleno = 264 (0x108), region = 32  ;;  %397 = vmatprep.mubr.msk.f32.mxu0 (!%p160_p10), %vm200_vm0, %v198_v0  ;;  %s182_s10 = sand.u32 (!%p160_p10), 1, %s519_s15  }
  0x12   : > { %s382_s11 = sshll.u32 (!%p160_p10), %s182_s10, 4  ;;  %s391_s0 = sshll.u32 (!%p160_p10), %s527_s17, 8 }
  0x13   : > { %s184_s12 = scalar_lea.vmem (!%p160_p10), [#allocation3], %s382_s11  ;;  %s636_s24 = scalar_lea.hbm (!%p160_p10), %s687_s3, %s391_s0 }
  0x14   : > { %s302_s13 = sshll.u32 (!%p160_p10), %s184_s12, 4  ;;  %s537_s28 = smov (!%p160_p10), [#allocation3]   ;;  %s631_s13 = int_to_ptr.vmem [resolvable:$true] %s302_s13 }
  0x15   : > { %s461_s29 = sshll.u32 (!%p160_p10), %s537_s28, 4  ;;  %s462_s29 = int_to_ptr.vmem [resolvable:$false] %s461_s29 }
  0x16   : > { %v195_v2 = vstv (!%p160_p10), %s192_s27  ;;  %s638_s27 = scalar_lea.sflag (!%p160_p10), [#allocation4], %s182_s10  ;;  %p464_p1 = scmp.lt.s32.totalorder (!%p160_p10), %s631_s13, %s462_s29 }
  0x18   : > { %s186_s30 = scalar_select %p185_p11, %s527_s17, 1 }
  0x19   : > { %s457_s17 = scalar_lea.vmem %s631_s13, 256 }
  0x1a   : > { %s383_s4 = sshll.u32 %s186_s30, 3  ;;  %p458_p12 = scmp.ne.s32.totalorder %s631_s13, %s457_s17 }
  0x1b   : > { %s191_s7 = scalar_lea.vmem %s686_s2, %s383_s4  ;;  %s463_s30 = scalar_lea.vmem %s462_s29, 512 }
  0x1c   : > { %v193_v1 = vld [vmem:[%s191_s7] sm:$0xff]  ;;  %p459_p13 = pnand %p458_p12, %p603_p4  ;;  %p465_p2 = scmp.lt.s32.totalorder %s463_s30, %s457_s17 }
  0x1d   : > { %vm194_vm1 = vcmp.gt.f32.partialorder %v193_v1, 0.0  ;;  %v196_v3 = vmul.f32 %v195_v2, %v193_v1 }
  0x1e   : > { %p460_p0 = pneg %p459_p13  ;;  %p466_p3 = por %p465_p2, %p464_p1 }
  0x1f   : > { %v197_v4 = vsel %vm194_vm1, %v193_v1, %v196_v3 }
  0x20   : > { %395 = vmatprep.subr.mxu0 %v197_v4  ;;  %p467_p5 = pnand %p466_p3, %p460_p0 }
  0x21   : > { %396 = vmatpush3.msra.mxu0 %v197_v4 }
  0x22   : > { %398 = vmatmul.mubr.msk.f32.vlgmr.msra.gmra.mrb[0].mxu0 %vm200_vm0, %v199_v5 }
  0xf5   : > { %v399_v6 = vpop.f32.mrb[0].mxu0 }
  0xf6   : > { %v283_v7 = vmax.f32 %v399_v6, 0.0  ;;  %v273_v8 = vpop.f32.mrb[1].mxu0 }
  0xf7   : > { %v282_v9 = vmax.f32 %v273_v8, 0.0 }
  0xf8   : > { %286 = vst.msk [vmem:[%s184_s12 + $0x8] sm:$0xff] %vm284_vm2, %v283_v7 }
  0xf9   : > { %285 = vst.msk [vmem:[%s184_s12] sm:$0xff] %vm284_vm2, %v282_v9 }
  0xfa   : > { %470 = shalt.err (!%p467_p5)
}
  0xfb   : > { %s471_s4 = scalar_lea.hbm %s636_s24, 256  ;;  %s475_s7 = scalar_lea.hbm %s687_s3, 512 }
  0xfc   : > { %p472_p6 = scmp.ne.s32.totalorder %s636_s24, %s471_s4  ;;  %p476_p10 = scmp.lt.u32.totalorder %s636_s24, %s687_s3 }
  0xfd   : > { %p477_p11 = scmp.lt.u32.totalorder %s475_s7, %s471_s4  ;;  %p479_p13 = scmp.lt.u32.totalorder %s471_s4, %s636_s24 }
  0xfe   : > { %p473_p7 = pnand %p472_p6, %p603_p4 }
  0xff   : > { %p478_p12 = por %p477_p11, %p476_p10 }
 0x100   : > { %p474_p9 = pneg %p473_p7 }
 0x101   : > { %p480_p0 = por %p479_p13, %p478_p12 }
 0x103   : > { %p481_p1 = pnand %p480_p0, %p474_p9 }
 0x105   : > { %484 = shalt.err (!%p481_p1)
}
 0x106   : > { %s538_s10 = smov 128   ;;  %s539_s11 = smov 8  }
 0x107   : > { %400 = dma.vmem_to_hbm [thread:$0]  (%p603_p4), %s631_s13, 256, %s636_s24, %s638_s27, %s538_s10, %s538_s10, %s539_s11  }
 0x108 PF: > { %p406_p2 = scmp.ge.s32.totalorder %s535_s19, 2  ;;  %s317_s12 = sand.u32 1, %s515_s14  }
 0x109   : > { %s318_s0 = scalar_lea.sflag [#allocation4], %s317_s12 }
 0x10a   : > { %p403_p3 = pnand %p406_p2, %p610_p8 }
 0x10c   : > { %510 = dma.done.wait (!%p403_p3), %s318_s0, 256  }
 0x10d   : > { %512 = vsyncadd (!%p403_p3), %s318_s0, 4294967040  ;;  %s17_s19 = sadd.s32 1, %s535_s19   ;;  %s690_s14 = smov %s519_s15 }
 0x10e   : > { %p14_p5 = scmp.ge.s32.totalorder %s17_s19, 4   ;;  %s691_s15 = smov %s523_s16 }
 0x10f   : > { %s692_s16 = smov %s616_s26  ;;  %s693_s17 = smov %s531_s18 }
 0x110   : > { %s694_s18 = smov %s696_s21  ;;  %16 = sbr.rel (!%p14_p5) target bundleno = 6 (0x6), region = 67 }
 0x117   :  { %323 = vsyncpa [#allocation4], 1 }
 0x118   :  { %325 = vsyncpa [#allocation4 + $0x1], 1 }

</bundles_post_ra>
